<compile_context>
chip_gen: v5e
topology: v5e:2x2
jax: 0.10.0
libtpu: 0.0.40
codegen_flags: <defaults>
</compile_context>

<pallas_src>
import functools
import math

import jax
import jax.numpy as jnp
from jax import lax
from jax.experimental import pallas as pl
from jax.experimental.pallas import tpu as pltpu

# ----------------------------- model dims -----------------------------------
D_MODEL = 32
N_HEADS = 4
D_K = D_MODEL // N_HEADS
D_FF = 64
BATCH = 2
S_TGT = 8
S_SRC = 8
EPS = 1e-6  # Annotated-Transformer LayerNorm eps

# ---- packed "vector" slab row layout (each row: data in cols [0:width)) ----
V_LN0_G, V_LN0_B = 0, 1
V_LN1_G, V_LN1_B = 2, 3
V_LN2_G, V_LN2_B = 4, 5
V_B_QKV_S = 6          # (1, 96)  self-attn QKV bias (Q part pre-scaled)
V_B_O_S = 7            # (1, 32)
V_B_Q_C = 8            # (1, 32)  cross-attn Q bias (pre-scaled)
V_B_KV_C = 9           # (1, 64)
V_B_O_C = 10           # (1, 32)
V_B_FF1 = 11           # (1, 64)
V_B_FF2 = 12           # (1, 32)
VEC_ROWS = 16          # pad to sublane multiple

# ---- packed "32-row weight" slab column layout (128-lane aligned starts) ----
W_QKV_S = 0 * 128      # (32, 96)  [Wq*scale | Wk | Wv]   self-attn
W_O_S = 1 * 128        # (32, 32)
W_Q_C = 2 * 128        # (32, 32)  Wq*scale               cross-attn
W_KV_C = 3 * 128       # (32, 64)  [Wk | Wv]
W_O_C = 4 * 128        # (32, 32)
W_FF1 = 5 * 128        # (32, 64)
W32_COLS = 6 * 128


# ----------------------------- in-kernel helpers ------------------------------
def _layer_norm(x, g, b):
    # Annotated Transformer: a_2 * (x - mean) / (std + eps) + b_2, unbiased std.
    d = x.shape[-1]
    mean = jnp.mean(x, axis=-1, keepdims=True)
    var = jnp.sum((x - mean) ** 2, axis=-1, keepdims=True) * (1.0 / (d - 1))
    inv = pl.reciprocal(jnp.sqrt(var) + EPS, approx=False)  # exact: not on crit path
    return g * (x - mean) * inv + b


def _mha(q, k, v, bias, w_o, b_o):
    """2-D multi-head attention.

    q: (B*Sq, D_MODEL) with 1/sqrt(d_k) folded into the Q projection.
    k, v: (B*Sk, D_MODEL).
    bias: (B*Sq, B*Sk) additive mask; -1e9 off the batch-diagonal blocks and
          wherever the original mask is 0, so batching is free in 2-D matmuls.
    w_o: (D_MODEL, D_MODEL) output projection (loaded once), b_o: (1, D_MODEL).
    """
    outs = []
    for h in range(N_HEADS):  # short unrolled loop, all inside one invocation
        lo = h * D_K
        s = lax.dot_general(q[:, lo:lo + D_K], k[:, lo:lo + D_K],
                            (((1,), (1,)), ((), ())),
                            preferred_element_type=jnp.float32)   # (B*Sq, B*Sk)
        # No max-subtraction: scores are small and the -1e9 bias only pushes
        # exp() to 0 (never overflows).
        p = jnp.exp(s + bias)
        p = p * pl.reciprocal(jnp.sum(p, axis=-1, keepdims=True), approx=True)
        outs.append(jnp.dot(p, v[:, lo:lo + D_K],
                            preferred_element_type=jnp.float32))  # (B*Sq, D_K)
    heads = jnp.concatenate(outs, axis=1)                         # (B*Sq, D_MODEL)
    return jnp.dot(heads, w_o, preferred_element_type=jnp.float32) + b_o


# ----------------------------- fused kernel ----------------------------------
def _decoder_layer_kernel(x_ref, mem_ref, bias_ref, vec_ref, w32_ref, wff2_ref,
                          o_ref, *, batch, s_tgt, s_src):
    bst = batch * s_tgt
    bss = batch * s_src

    x = x_ref[...]        # (B*S_tgt, D_MODEL), stays resident in VMEM
    mem = mem_ref[...]    # (B*S_src, D_MODEL)
    tgt_bias = bias_ref[0:bst, 0:bst]
    src_bias = bias_ref[bst:2 * bst, 0:bss]

    def vec(row, width):  # static slice of the packed vector slab
        return vec_ref[row:row + 1, 0:width]

    # ---- sublayer 0: self-attention -----------------------------------------
    xn = _layer_norm(x, vec(V_LN0_G, D_MODEL), vec(V_LN0_B, D_MODEL))
    qkv = (jnp.dot(xn, w32_ref[:, W_QKV_S:W_QKV_S + 3 * D_MODEL],
                   preferred_element_type=jnp.float32)
           + vec(V_B_QKV_S, 3 * D_MODEL))
    x = x + _mha(qkv[:, :D_MODEL], qkv[:, D_MODEL:2 * D_MODEL],
                 qkv[:, 2 * D_MODEL:], tgt_bias,
                 w32_ref[:, W_O_S:W_O_S + D_MODEL], vec(V_B_O_S, D_MODEL))

    # ---- sublayer 1: cross-attention (K/V from raw memory) ------------------
    xn = _layer_norm(x, vec(V_LN1_G, D_MODEL), vec(V_LN1_B, D_MODEL))
    q = (jnp.dot(xn, w32_ref[:, W_Q_C:W_Q_C + D_MODEL],
                 preferred_element_type=jnp.float32) + vec(V_B_Q_C, D_MODEL))
    kv = (jnp.dot(mem, w32_ref[:, W_KV_C:W_KV_C + 2 * D_MODEL],
                  preferred_element_type=jnp.float32) + vec(V_B_KV_C, 2 * D_MODEL))
    x = x + _mha(q, kv[:, :D_MODEL], kv[:, D_MODEL:], src_bias,
                 w32_ref[:, W_O_C:W_O_C + D_MODEL], vec(V_B_O_C, D_MODEL))

    # ---- sublayer 2: position-wise feed-forward ------------------------------
    xn = _layer_norm(x, vec(V_LN2_G, D_MODEL), vec(V_LN2_B, D_MODEL))
    hdn = jnp.maximum(
        jnp.dot(xn, w32_ref[:, W_FF1:W_FF1 + D_FF],
                preferred_element_type=jnp.float32) + vec(V_B_FF1, D_FF), 0.0)
    x = x + (jnp.dot(hdn, wff2_ref[...], preferred_element_type=jnp.float32)
             + vec(V_B_FF2, D_MODEL))

    o_ref[...] = x


# ----------------------------- one-time packing (outside hot path) -----------
def pack_params(params):
    """Fold the 1/sqrt(d_k) scale, fuse QKV / KV, and pack everything into
    two slabs. Called ONCE when params are created/updated."""
    sa, ca, ff = params["self_attn"], params["src_attn"], params["ff"]
    scale = 1.0 / math.sqrt(D_K)

    w32 = jnp.zeros((D_MODEL, W32_COLS), jnp.float32)

    def put(slab, col, w):
        return slab.at[:, col:col + w.shape[1]].set(w)

    w32 = put(w32, W_QKV_S, jnp.concatenate(
        [sa["wq"] * scale, sa["wk"], sa["wv"]], axis=1))
    w32 = put(w32, W_O_S, sa["wo"])
    w32 = put(w32, W_Q_C, ca["wq"] * scale)
    w32 = put(w32, W_KV_C, jnp.concatenate([ca["wk"], ca["wv"]], axis=1))
    w32 = put(w32, W_O_C, ca["wo"])
    w32 = put(w32, W_FF1, ff["w1"])

    rows = {
        V_LN0_G: params["ln0"]["g"], V_LN0_B: params["ln0"]["b"],
        V_LN1_G: params["ln1"]["g"], V_LN1_B: params["ln1"]["b"],
        V_LN2_G: params["ln2"]["g"], V_LN2_B: params["ln2"]["b"],
        V_B_QKV_S: jnp.concatenate(
            [sa["bq"] * scale, sa["bk"], sa["bv"]], axis=1),
        V_B_O_S: sa["bo"],
        V_B_Q_C: ca["bq"] * scale,
        V_B_KV_C: jnp.concatenate([ca["bk"], ca["bv"]], axis=1),
        V_B_O_C: ca["bo"],
        V_B_FF1: ff["b1"],
        V_B_FF2: ff["b2"],
    }
    vecs = jnp.zeros((VEC_ROWS, 128), jnp.float32)
    for r, val in rows.items():
        vecs = vecs.at[r:r + 1, 0:val.shape[1]].set(val)

    return dict(vecs=vecs, w32=w32, w_ff2=ff["w2"])


def build_attn_bias(mask, batch, sq, sk):
    """mask: (B, sq, sk) with 1 = attend. Returns the (B*sq, B*sk) additive
    bias used by the 2-D attention: 0 on kept positions of the batch-diagonal
    blocks, -1e9 everywhere else. Built once, outside the hot path."""
    keep = mask.astype(jnp.float32)
    eye = jnp.eye(batch, dtype=jnp.float32)
    full = keep[:, :, None, :] * eye[:, None, :, None]        # (B, sq, B, sk)
    return (full.reshape(batch * sq, batch * sk) - 1.0) * jnp.float32(1e9)


# ----------------------------- wrapper ----------------------------------------
def decoder_layer(packed, x, memory, bias):
    """packed: output of pack_params; bias: concat([tgt_bias, src_bias], axis=0)."""
    b, s_t, d = x.shape
    s_s = memory.shape[1]
    args = (x.reshape(b * s_t, d), memory.reshape(b * s_s, d), bias,
            packed["vecs"], packed["w32"], packed["w_ff2"])

    out2d = pl.pallas_call(
        functools.partial(_decoder_layer_kernel, batch=b, s_tgt=s_t, s_src=s_s),
        out_shape=jax.ShapeDtypeStruct((b * s_t, d), jnp.float32),
        in_specs=[pl.BlockSpec(memory_space=pltpu.MemorySpace.VMEM)] * len(args),
        out_specs=pl.BlockSpec(memory_space=pltpu.MemorySpace.VMEM),
    )(*args)
    # NOTE: at scaled-up shapes add a row grid (dimension_semantics=("parallel",))
    # and re-derive tiles against v7x's 64 MiB VMEM; unnecessary at this size.
    return out2d.reshape(b, s_t, d)


# ----------------------------- param init ------------------------------------
def _init_linear(key, din, dout):
    k1, k2 = jax.random.split(key)
    w = 0.02 * jax.random.normal(k1, (din, dout), jnp.float32)
    b = 0.02 * jax.random.normal(k2, (1, dout), jnp.float32)
    return w, b


def _init_attn(key):
    ks = jax.random.split(key, 4)
    wq, bq = _init_linear(ks[0], D_MODEL, D_MODEL)
    wk, bk = _init_linear(ks[1], D_MODEL, D_MODEL)
    wv, bv = _init_linear(ks[2], D_MODEL, D_MODEL)
    wo, bo = _init_linear(ks[3], D_MODEL, D_MODEL)
    return dict(wq=wq, bq=bq, wk=wk, bk=bk, wv=wv, bv=bv, wo=wo, bo=bo)


def _init_ln():
    return dict(g=jnp.ones((1, D_MODEL), jnp.float32),
                b=jnp.zeros((1, D_MODEL), jnp.float32))


def init_params(key):
    ks = jax.random.split(key, 4)
    w1, b1 = _init_linear(ks[2], D_MODEL, D_FF)
    w2, b2 = _init_linear(ks[3], D_FF, D_MODEL)
    return dict(
        self_attn=_init_attn(ks[0]),
        src_attn=_init_attn(ks[1]),
        ff=dict(w1=w1, b1=b1, w2=w2, b2=b2),
        ln0=_init_ln(), ln1=_init_ln(), ln2=_init_ln(),
    )


# ----------------------------- main -------------------------------------------
if __name__ == "__main__":
    key = jax.random.PRNGKey(0)
    kp, kx, km = jax.random.split(key, 3)
    params = init_params(kp)
    packed = pack_params(params)          # one-time packing, off the hot path

    x = jax.random.normal(kx, (BATCH, S_TGT, D_MODEL), jnp.float32)
    memory = jax.random.normal(km, (BATCH, S_SRC, D_MODEL), jnp.float32)

    # tgt_mask: causal (subsequent) mask; src_mask: no padding (all ones).
    tgt_mask = jnp.broadcast_to(
        jnp.tril(jnp.ones((S_TGT, S_TGT), jnp.float32)), (BATCH, S_TGT, S_TGT))
    src_mask = jnp.ones((BATCH, S_TGT, S_SRC), jnp.float32)

    # Block-diagonal additive biases, built once outside the jitted call.
    bias = jnp.concatenate(
        [build_attn_bias(tgt_mask, BATCH, S_TGT, S_TGT),
         build_attn_bias(src_mask, BATCH, S_TGT, S_SRC)], axis=0)

    out = jax.jit(decoder_layer)(packed, x, memory, bias)
    jax.block_until_ready(out)
    assert out.shape == (BATCH, S_TGT, D_MODEL)
    print("KERNEL_OK")
</pallas_src>

<mosaic_0001>
module attributes {stable_mosaic.version = 11 : i64} {
  func.func @_decoder_layer_kernel(%arg0: memref<16x32xf32, #tpu.memory_space<vmem>>, %arg1: memref<16x32xf32, #tpu.memory_space<vmem>>, %arg2: memref<32x16xf32, #tpu.memory_space<vmem>>, %arg3: memref<16x128xf32, #tpu.memory_space<vmem>>, %arg4: memref<32x768xf32, #tpu.memory_space<vmem>>, %arg5: memref<64x32xf32, #tpu.memory_space<vmem>>, %arg6: memref<16x32xf32, #tpu.memory_space<vmem>>) attributes {dimension_semantics = [], scalar_prefetch = 0 : i64, scratch_operands = 0 : i64, tpu.core_type = #tpu.core_type<tc>} {
    %c0 = arith.constant 0 : index
    %c0_0 = arith.constant 0 : index
    %0 = vector.load %arg0[%c0, %c0_0] : memref<16x32xf32, #tpu.memory_space<vmem>>, vector<16x32xf32>
    %c0_1 = arith.constant 0 : index
    %c0_2 = arith.constant 0 : index
    %1 = vector.load %arg1[%c0_1, %c0_2] : memref<16x32xf32, #tpu.memory_space<vmem>>, vector<16x32xf32>
    %c0_3 = arith.constant 0 : index
    %c0_4 = arith.constant 0 : index
    %2 = vector.load %arg2[%c0_3, %c0_4] : memref<32x16xf32, #tpu.memory_space<vmem>>, vector<16x16xf32>
    %c16 = arith.constant 16 : index
    %c0_5 = arith.constant 0 : index
    %3 = vector.load %arg2[%c16, %c0_5] : memref<32x16xf32, #tpu.memory_space<vmem>>, vector<16x16xf32>
    %c0_6 = arith.constant 0 : index
    %c0_7 = arith.constant 0 : index
    %4 = vector.load %arg3[%c0_6, %c0_7] : memref<16x128xf32, #tpu.memory_space<vmem>>, vector<1x32xf32>
    %c1 = arith.constant 1 : index
    %c0_8 = arith.constant 0 : index
    %5 = vector.load %arg3[%c1, %c0_8] : memref<16x128xf32, #tpu.memory_space<vmem>>, vector<1x32xf32>
    %cst = arith.constant dense<0.000000e+00> : vector<16xf32>
    %6 = vector.multi_reduction <add>, %0, %cst [1] : vector<16x32xf32> to vector<16xf32>
    %7 = vector.shape_cast %6 : vector<16xf32> to vector<16x1xf32>
    %cst_9 = arith.constant 3.200000e+01 : f32
    %8 = vector.broadcast %cst_9 : f32 to vector<16x1xf32>
    %9 = arith.divf %7, %8 : vector<16x1xf32>
    %10 = vector.broadcast %9 : vector<16x1xf32> to vector<16x32xf32>
    %11 = arith.subf %0, %10 : vector<16x32xf32>
    %12 = arith.mulf %11, %11 : vector<16x32xf32>
    %cst_10 = arith.constant dense<0.000000e+00> : vector<16xf32>
    %13 = vector.multi_reduction <add>, %12, %cst_10 [1] : vector<16x32xf32> to vector<16xf32>
    %14 = vector.shape_cast %13 : vector<16xf32> to vector<16x1xf32>
    %cst_11 = arith.constant 0.0322580636 : f32
    %15 = vector.broadcast %cst_11 : f32 to vector<16x1xf32>
    %16 = arith.mulf %14, %15 : vector<16x1xf32>
    %17 = math.sqrt %16 : vector<16x1xf32>
    %cst_12 = arith.constant 9.99999997E-7 : f32
    %18 = vector.broadcast %cst_12 : f32 to vector<16x1xf32>
    %19 = arith.addf %17, %18 : vector<16x1xf32>
    %20 = tpu.reciprocal %19 : vector<16x1xf32> -> vector<16x1xf32>
    %21 = vector.broadcast %9 : vector<16x1xf32> to vector<16x32xf32>
    %22 = arith.subf %0, %21 : vector<16x32xf32>
    %23 = vector.broadcast %4 : vector<1x32xf32> to vector<16x32xf32>
    %24 = arith.mulf %23, %22 : vector<16x32xf32>
    %25 = vector.broadcast %20 : vector<16x1xf32> to vector<16x32xf32>
    %26 = arith.mulf %24, %25 : vector<16x32xf32>
    %27 = vector.broadcast %5 : vector<1x32xf32> to vector<16x32xf32>
    %28 = arith.addf %26, %27 : vector<16x32xf32>
    %c0_13 = arith.constant 0 : index
    %c0_14 = arith.constant 0 : index
    %29 = vector.load %arg4[%c0_13, %c0_14] : memref<32x768xf32, #tpu.memory_space<vmem>>, vector<32x96xf32>
    %cst_15 = arith.constant dense<0.000000e+00> : vector<16x96xf32>
    %30 = tpu.matmul %28, %29, %cst_15 {dimension_numbers = #tpu.dot_dimension_numbers<[1], [0], [0], [1], [0, 0, 1, 1], [], []>} : vector<16x32xf32>, vector<32x96xf32>, vector<16x96xf32> -> vector<16x96xf32>
    %c6 = arith.constant 6 : index
    %c0_16 = arith.constant 0 : index
    %31 = vector.load %arg3[%c6, %c0_16] : memref<16x128xf32, #tpu.memory_space<vmem>>, vector<1x96xf32>
    %32 = vector.broadcast %31 : vector<1x96xf32> to vector<16x96xf32>
    %33 = arith.addf %30, %32 : vector<16x96xf32>
    %34 = vector.extract_strided_slice %33 {offsets = [0, 0], sizes = [16, 32], strides = [1, 1]} : vector<16x96xf32> to vector<16x32xf32>
    %35 = vector.extract_strided_slice %33 {offsets = [0, 32], sizes = [16, 32], strides = [1, 1]} : vector<16x96xf32> to vector<16x32xf32>
    %36 = vector.extract_strided_slice %33 {offsets = [0, 64], sizes = [16, 32], strides = [1, 1]} : vector<16x96xf32> to vector<16x32xf32>
    %c0_17 = arith.constant 0 : index
    %c128 = arith.constant 128 : index
    %37 = vector.load %arg4[%c0_17, %c128] : memref<32x768xf32, #tpu.memory_space<vmem>>, vector<32x32xf32>
    %c7 = arith.constant 7 : index
    %c0_18 = arith.constant 0 : index
    %38 = vector.load %arg3[%c7, %c0_18] : memref<16x128xf32, #tpu.memory_space<vmem>>, vector<1x32xf32>
    %39 = vector.extract_strided_slice %34 {offsets = [0, 0], sizes = [16, 8], strides = [1, 1]} : vector<16x32xf32> to vector<16x8xf32>
    %40 = vector.extract_strided_slice %35 {offsets = [0, 0], sizes = [16, 8], strides = [1, 1]} : vector<16x32xf32> to vector<16x8xf32>
    %cst_19 = arith.constant dense<0.000000e+00> : vector<16x16xf32>
    %41 = tpu.matmul %39, %40, %cst_19 {dimension_numbers = #tpu.dot_dimension_numbers<[1], [1], [0], [0], [0, 0, 1, 0], [], []>} : vector<16x8xf32>, vector<16x8xf32>, vector<16x16xf32> -> vector<16x16xf32>
    %42 = arith.addf %41, %2 : vector<16x16xf32>
    %43 = math.exp %42 : vector<16x16xf32>
    %cst_20 = arith.constant dense<0.000000e+00> : vector<16xf32>
    %44 = vector.multi_reduction <add>, %43, %cst_20 [1] : vector<16x16xf32> to vector<16xf32>
    %45 = vector.shape_cast %44 : vector<16xf32> to vector<16x1xf32>
    %46 = tpu.reciprocal %45 {approx = true} : vector<16x1xf32> -> vector<16x1xf32>
    %47 = vector.broadcast %46 : vector<16x1xf32> to vector<16x16xf32>
    %48 = arith.mulf %43, %47 : vector<16x16xf32>
    %49 = vector.extract_strided_slice %36 {offsets = [0, 0], sizes = [16, 8], strides = [1, 1]} : vector<16x32xf32> to vector<16x8xf32>
    %cst_21 = arith.constant dense<0.000000e+00> : vector<16x8xf32>
    %50 = tpu.matmul %48, %49, %cst_21 {dimension_numbers = #tpu.dot_dimension_numbers<[1], [0], [0], [1], [0, 0, 1, 1], [], []>} : vector<16x16xf32>, vector<16x8xf32>, vector<16x8xf32> -> vector<16x8xf32>
    %51 = vector.extract_strided_slice %34 {offsets = [0, 8], sizes = [16, 8], strides = [1, 1]} : vector<16x32xf32> to vector<16x8xf32>
    %52 = vector.extract_strided_slice %35 {offsets = [0, 8], sizes = [16, 8], strides = [1, 1]} : vector<16x32xf32> to vector<16x8xf32>
    %cst_22 = arith.constant dense<0.000000e+00> : vector<16x16xf32>
    %53 = tpu.matmul %51, %52, %cst_22 {dimension_numbers = #tpu.dot_dimension_numbers<[1], [1], [0], [0], [0, 0, 1, 0], [], []>} : vector<16x8xf32>, vector<16x8xf32>, vector<16x16xf32> -> vector<16x16xf32>
    %54 = arith.addf %53, %2 : vector<16x16xf32>
    %55 = math.exp %54 : vector<16x16xf32>
    %cst_23 = arith.constant dense<0.000000e+00> : vector<16xf32>
    %56 = vector.multi_reduction <add>, %55, %cst_23 [1] : vector<16x16xf32> to vector<16xf32>
    %57 = vector.shape_cast %56 : vector<16xf32> to vector<16x1xf32>
    %58 = tpu.reciprocal %57 {approx = true} : vector<16x1xf32> -> vector<16x1xf32>
    %59 = vector.broadcast %58 : vector<16x1xf32> to vector<16x16xf32>
    %60 = arith.mulf %55, %59 : vector<16x16xf32>
    %61 = vector.extract_strided_slice %36 {offsets = [0, 8], sizes = [16, 8], strides = [1, 1]} : vector<16x32xf32> to vector<16x8xf32>
    %cst_24 = arith.constant dense<0.000000e+00> : vector<16x8xf32>
    %62 = tpu.matmul %60, %61, %cst_24 {dimension_numbers = #tpu.dot_dimension_numbers<[1], [0], [0], [1], [0, 0, 1, 1], [], []>} : vector<16x16xf32>, vector<16x8xf32>, vector<16x8xf32> -> vector<16x8xf32>
    %63 = vector.extract_strided_slice %34 {offsets = [0, 16], sizes = [16, 8], strides = [1, 1]} : vector<16x32xf32> to vector<16x8xf32>
    %64 = vector.extract_strided_slice %35 {offsets = [0, 16], sizes = [16, 8], strides = [1, 1]} : vector<16x32xf32> to vector<16x8xf32>
    %cst_25 = arith.constant dense<0.000000e+00> : vector<16x16xf32>
    %65 = tpu.matmul %63, %64, %cst_25 {dimension_numbers = #tpu.dot_dimension_numbers<[1], [1], [0], [0], [0, 0, 1, 0], [], []>} : vector<16x8xf32>, vector<16x8xf32>, vector<16x16xf32> -> vector<16x16xf32>
    %66 = arith.addf %65, %2 : vector<16x16xf32>
    %67 = math.exp %66 : vector<16x16xf32>
    %cst_26 = arith.constant dense<0.000000e+00> : vector<16xf32>
    %68 = vector.multi_reduction <add>, %67, %cst_26 [1] : vector<16x16xf32> to vector<16xf32>
    %69 = vector.shape_cast %68 : vector<16xf32> to vector<16x1xf32>
    %70 = tpu.reciprocal %69 {approx = true} : vector<16x1xf32> -> vector<16x1xf32>
    %71 = vector.broadcast %70 : vector<16x1xf32> to vector<16x16xf32>
    %72 = arith.mulf %67, %71 : vector<16x16xf32>
    %73 = vector.extract_strided_slice %36 {offsets = [0, 16], sizes = [16, 8], strides = [1, 1]} : vector<16x32xf32> to vector<16x8xf32>
    %cst_27 = arith.constant dense<0.000000e+00> : vector<16x8xf32>
    %74 = tpu.matmul %72, %73, %cst_27 {dimension_numbers = #tpu.dot_dimension_numbers<[1], [0], [0], [1], [0, 0, 1, 1], [], []>} : vector<16x16xf32>, vector<16x8xf32>, vector<16x8xf32> -> vector<16x8xf32>
    %75 = vector.extract_strided_slice %34 {offsets = [0, 24], sizes = [16, 8], strides = [1, 1]} : vector<16x32xf32> to vector<16x8xf32>
    %76 = vector.extract_strided_slice %35 {offsets = [0, 24], sizes = [16, 8], strides = [1, 1]} : vector<16x32xf32> to vector<16x8xf32>
    %cst_28 = arith.constant dense<0.000000e+00> : vector<16x16xf32>
    %77 = tpu.matmul %75, %76, %cst_28 {dimension_numbers = #tpu.dot_dimension_numbers<[1], [1], [0], [0], [0, 0, 1, 0], [], []>} : vector<16x8xf32>, vector<16x8xf32>, vector<16x16xf32> -> vector<16x16xf32>
    %78 = arith.addf %77, %2 : vector<16x16xf32>
    %79 = math.exp %78 : vector<16x16xf32>
    %cst_29 = arith.constant dense<0.000000e+00> : vector<16xf32>
    %80 = vector.multi_reduction <add>, %79, %cst_29 [1] : vector<16x16xf32> to vector<16xf32>
    %81 = vector.shape_cast %80 : vector<16xf32> to vector<16x1xf32>
    %82 = tpu.reciprocal %81 {approx = true} : vector<16x1xf32> -> vector<16x1xf32>
    %83 = vector.broadcast %82 : vector<16x1xf32> to vector<16x16xf32>
    %84 = arith.mulf %79, %83 : vector<16x16xf32>
    %85 = vector.extract_strided_slice %36 {offsets = [0, 24], sizes = [16, 8], strides = [1, 1]} : vector<16x32xf32> to vector<16x8xf32>
    %cst_30 = arith.constant dense<0.000000e+00> : vector<16x8xf32>
    %86 = tpu.matmul %84, %85, %cst_30 {dimension_numbers = #tpu.dot_dimension_numbers<[1], [0], [0], [1], [0, 0, 1, 1], [], []>} : vector<16x16xf32>, vector<16x8xf32>, vector<16x8xf32> -> vector<16x8xf32>
    %87 = tpu.concatenate %50, %62, %74, %86 in 1 : vector<16x8xf32>, vector<16x8xf32>, vector<16x8xf32>, vector<16x8xf32> -> vector<16x32xf32>
    %cst_31 = arith.constant dense<0.000000e+00> : vector<16x32xf32>
    %88 = tpu.matmul %87, %37, %cst_31 {dimension_numbers = #tpu.dot_dimension_numbers<[1], [0], [0], [1], [0, 0, 1, 1], [], []>} : vector<16x32xf32>, vector<32x32xf32>, vector<16x32xf32> -> vector<16x32xf32>
    %89 = vector.broadcast %38 : vector<1x32xf32> to vector<16x32xf32>
    %90 = arith.addf %88, %89 : vector<16x32xf32>
    %91 = arith.addf %0, %90 : vector<16x32xf32>
    %c2 = arith.constant 2 : index
    %c0_32 = arith.constant 0 : index
    %92 = vector.load %arg3[%c2, %c0_32] : memref<16x128xf32, #tpu.memory_space<vmem>>, vector<1x32xf32>
    %c3 = arith.constant 3 : index
    %c0_33 = arith.constant 0 : index
    %93 = vector.load %arg3[%c3, %c0_33] : memref<16x128xf32, #tpu.memory_space<vmem>>, vector<1x32xf32>
    %cst_34 = arith.constant dense<0.000000e+00> : vector<16xf32>
    %94 = vector.multi_reduction <add>, %91, %cst_34 [1] : vector<16x32xf32> to vector<16xf32>
    %95 = vector.shape_cast %94 : vector<16xf32> to vector<16x1xf32>
    %cst_35 = arith.constant 3.200000e+01 : f32
    %96 = vector.broadcast %cst_35 : f32 to vector<16x1xf32>
    %97 = arith.divf %95, %96 : vector<16x1xf32>
    %98 = vector.broadcast %97 : vector<16x1xf32> to vector<16x32xf32>
    %99 = arith.subf %91, %98 : vector<16x32xf32>
    %100 = arith.mulf %99, %99 : vector<16x32xf32>
    %cst_36 = arith.constant dense<0.000000e+00> : vector<16xf32>
    %101 = vector.multi_reduction <add>, %100, %cst_36 [1] : vector<16x32xf32> to vector<16xf32>
    %102 = vector.shape_cast %101 : vector<16xf32> to vector<16x1xf32>
    %cst_37 = arith.constant 0.0322580636 : f32
    %103 = vector.broadcast %cst_37 : f32 to vector<16x1xf32>
    %104 = arith.mulf %102, %103 : vector<16x1xf32>
    %105 = math.sqrt %104 : vector<16x1xf32>
    %cst_38 = arith.constant 9.99999997E-7 : f32
    %106 = vector.broadcast %cst_38 : f32 to vector<16x1xf32>
    %107 = arith.addf %105, %106 : vector<16x1xf32>
    %108 = tpu.reciprocal %107 : vector<16x1xf32> -> vector<16x1xf32>
    %109 = vector.broadcast %97 : vector<16x1xf32> to vector<16x32xf32>
    %110 = arith.subf %91, %109 : vector<16x32xf32>
    %111 = vector.broadcast %92 : vector<1x32xf32> to vector<16x32xf32>
    %112 = arith.mulf %111, %110 : vector<16x32xf32>
    %113 = vector.broadcast %108 : vector<16x1xf32> to vector<16x32xf32>
    %114 = arith.mulf %112, %113 : vector<16x32xf32>
    %115 = vector.broadcast %93 : vector<1x32xf32> to vector<16x32xf32>
    %116 = arith.addf %114, %115 : vector<16x32xf32>
    %c0_39 = arith.constant 0 : index
    %c256 = arith.constant 256 : index
    %117 = vector.load %arg4[%c0_39, %c256] : memref<32x768xf32, #tpu.memory_space<vmem>>, vector<32x32xf32>
    %cst_40 = arith.constant dense<0.000000e+00> : vector<16x32xf32>
    %118 = tpu.matmul %116, %117, %cst_40 {dimension_numbers = #tpu.dot_dimension_numbers<[1], [0], [0], [1], [0, 0, 1, 1], [], []>} : vector<16x32xf32>, vector<32x32xf32>, vector<16x32xf32> -> vector<16x32xf32>
    %c8 = arith.constant 8 : index
    %c0_41 = arith.constant 0 : index
    %119 = vector.load %arg3[%c8, %c0_41] : memref<16x128xf32, #tpu.memory_space<vmem>>, vector<1x32xf32>
    %120 = vector.broadcast %119 : vector<1x32xf32> to vector<16x32xf32>
    %121 = arith.addf %118, %120 : vector<16x32xf32>
    %c0_42 = arith.constant 0 : index
    %c384 = arith.constant 384 : index
    %122 = vector.load %arg4[%c0_42, %c384] : memref<32x768xf32, #tpu.memory_space<vmem>>, vector<32x64xf32>
    %cst_43 = arith.constant dense<0.000000e+00> : vector<16x64xf32>
    %123 = tpu.matmul %1, %122, %cst_43 {dimension_numbers = #tpu.dot_dimension_numbers<[1], [0], [0], [1], [0, 0, 1, 1], [], []>} : vector<16x32xf32>, vector<32x64xf32>, vector<16x64xf32> -> vector<16x64xf32>
    %c9 = arith.constant 9 : index
    %c0_44 = arith.constant 0 : index
    %124 = vector.load %arg3[%c9, %c0_44] : memref<16x128xf32, #tpu.memory_space<vmem>>, vector<1x64xf32>
    %125 = vector.broadcast %124 : vector<1x64xf32> to vector<16x64xf32>
    %126 = arith.addf %123, %125 : vector<16x64xf32>
    %127 = vector.extract_strided_slice %126 {offsets = [0, 0], sizes = [16, 32], strides = [1, 1]} : vector<16x64xf32> to vector<16x32xf32>
    %128 = vector.extract_strided_slice %126 {offsets = [0, 32], sizes = [16, 32], strides = [1, 1]} : vector<16x64xf32> to vector<16x32xf32>
    %c0_45 = arith.constant 0 : index
    %c512 = arith.constant 512 : index
    %129 = vector.load %arg4[%c0_45, %c512] : memref<32x768xf32, #tpu.memory_space<vmem>>, vector<32x32xf32>
    %c10 = arith.constant 10 : index
    %c0_46 = arith.constant 0 : index
    %130 = vector.load %arg3[%c10, %c0_46] : memref<16x128xf32, #tpu.memory_space<vmem>>, vector<1x32xf32>
    %131 = vector.extract_strided_slice %121 {offsets = [0, 0], sizes = [16, 8], strides = [1, 1]} : vector<16x32xf32> to vector<16x8xf32>
    %132 = vector.extract_strided_slice %127 {offsets = [0, 0], sizes = [16, 8], strides = [1, 1]} : vector<16x32xf32> to vector<16x8xf32>
    %cst_47 = arith.constant dense<0.000000e+00> : vector<16x16xf32>
    %133 = tpu.matmul %131, %132, %cst_47 {dimension_numbers = #tpu.dot_dimension_numbers<[1], [1], [0], [0], [0, 0, 1, 0], [], []>} : vector<16x8xf32>, vector<16x8xf32>, vector<16x16xf32> -> vector<16x16xf32>
    %134 = arith.addf %133, %3 : vector<16x16xf32>
    %135 = math.exp %134 : vector<16x16xf32>
    %cst_48 = arith.constant dense<0.000000e+00> : vector<16xf32>
    %136 = vector.multi_reduction <add>, %135, %cst_48 [1] : vector<16x16xf32> to vector<16xf32>
    %137 = vector.shape_cast %136 : vector<16xf32> to vector<16x1xf32>
    %138 = tpu.reciprocal %137 {approx = true} : vector<16x1xf32> -> vector<16x1xf32>
    %139 = vector.broadcast %138 : vector<16x1xf32> to vector<16x16xf32>
    %140 = arith.mulf %135, %139 : vector<16x16xf32>
    %141 = vector.extract_strided_slice %128 {offsets = [0, 0], sizes = [16, 8], strides = [1, 1]} : vector<16x32xf32> to vector<16x8xf32>
    %cst_49 = arith.constant dense<0.000000e+00> : vector<16x8xf32>
    %142 = tpu.matmul %140, %141, %cst_49 {dimension_numbers = #tpu.dot_dimension_numbers<[1], [0], [0], [1], [0, 0, 1, 1], [], []>} : vector<16x16xf32>, vector<16x8xf32>, vector<16x8xf32> -> vector<16x8xf32>
    %143 = vector.extract_strided_slice %121 {offsets = [0, 8], sizes = [16, 8], strides = [1, 1]} : vector<16x32xf32> to vector<16x8xf32>
    %144 = vector.extract_strided_slice %127 {offsets = [0, 8], sizes = [16, 8], strides = [1, 1]} : vector<16x32xf32> to vector<16x8xf32>
    %cst_50 = arith.constant dense<0.000000e+00> : vector<16x16xf32>
    %145 = tpu.matmul %143, %144, %cst_50 {dimension_numbers = #tpu.dot_dimension_numbers<[1], [1], [0], [0], [0, 0, 1, 0], [], []>} : vector<16x8xf32>, vector<16x8xf32>, vector<16x16xf32> -> vector<16x16xf32>
    %146 = arith.addf %145, %3 : vector<16x16xf32>
    %147 = math.exp %146 : vector<16x16xf32>
    %cst_51 = arith.constant dense<0.000000e+00> : vector<16xf32>
    %148 = vector.multi_reduction <add>, %147, %cst_51 [1] : vector<16x16xf32> to vector<16xf32>
    %149 = vector.shape_cast %148 : vector<16xf32> to vector<16x1xf32>
    %150 = tpu.reciprocal %149 {approx = true} : vector<16x1xf32> -> vector<16x1xf32>
    %151 = vector.broadcast %150 : vector<16x1xf32> to vector<16x16xf32>
    %152 = arith.mulf %147, %151 : vector<16x16xf32>
    %153 = vector.extract_strided_slice %128 {offsets = [0, 8], sizes = [16, 8], strides = [1, 1]} : vector<16x32xf32> to vector<16x8xf32>
    %cst_52 = arith.constant dense<0.000000e+00> : vector<16x8xf32>
    %154 = tpu.matmul %152, %153, %cst_52 {dimension_numbers = #tpu.dot_dimension_numbers<[1], [0], [0], [1], [0, 0, 1, 1], [], []>} : vector<16x16xf32>, vector<16x8xf32>, vector<16x8xf32> -> vector<16x8xf32>
    %155 = vector.extract_strided_slice %121 {offsets = [0, 16], sizes = [16, 8], strides = [1, 1]} : vector<16x32xf32> to vector<16x8xf32>
    %156 = vector.extract_strided_slice %127 {offsets = [0, 16], sizes = [16, 8], strides = [1, 1]} : vector<16x32xf32> to vector<16x8xf32>
    %cst_53 = arith.constant dense<0.000000e+00> : vector<16x16xf32>
    %157 = tpu.matmul %155, %156, %cst_53 {dimension_numbers = #tpu.dot_dimension_numbers<[1], [1], [0], [0], [0, 0, 1, 0], [], []>} : vector<16x8xf32>, vector<16x8xf32>, vector<16x16xf32> -> vector<16x16xf32>
    %158 = arith.addf %157, %3 : vector<16x16xf32>
    %159 = math.exp %158 : vector<16x16xf32>
    %cst_54 = arith.constant dense<0.000000e+00> : vector<16xf32>
    %160 = vector.multi_reduction <add>, %159, %cst_54 [1] : vector<16x16xf32> to vector<16xf32>
    %161 = vector.shape_cast %160 : vector<16xf32> to vector<16x1xf32>
    %162 = tpu.reciprocal %161 {approx = true} : vector<16x1xf32> -> vector<16x1xf32>
    %163 = vector.broadcast %162 : vector<16x1xf32> to vector<16x16xf32>
    %164 = arith.mulf %159, %163 : vector<16x16xf32>
    %165 = vector.extract_strided_slice %128 {offsets = [0, 16], sizes = [16, 8], strides = [1, 1]} : vector<16x32xf32> to vector<16x8xf32>
    %cst_55 = arith.constant dense<0.000000e+00> : vector<16x8xf32>
    %166 = tpu.matmul %164, %165, %cst_55 {dimension_numbers = #tpu.dot_dimension_numbers<[1], [0], [0], [1], [0, 0, 1, 1], [], []>} : vector<16x16xf32>, vector<16x8xf32>, vector<16x8xf32> -> vector<16x8xf32>
    %167 = vector.extract_strided_slice %121 {offsets = [0, 24], sizes = [16, 8], strides = [1, 1]} : vector<16x32xf32> to vector<16x8xf32>
    %168 = vector.extract_strided_slice %127 {offsets = [0, 24], sizes = [16, 8], strides = [1, 1]} : vector<16x32xf32> to vector<16x8xf32>
    %cst_56 = arith.constant dense<0.000000e+00> : vector<16x16xf32>
    %169 = tpu.matmul %167, %168, %cst_56 {dimension_numbers = #tpu.dot_dimension_numbers<[1], [1], [0], [0], [0, 0, 1, 0], [], []>} : vector<16x8xf32>, vector<16x8xf32>, vector<16x16xf32> -> vector<16x16xf32>
    %170 = arith.addf %169, %3 : vector<16x16xf32>
    %171 = math.exp %170 : vector<16x16xf32>
    %cst_57 = arith.constant dense<0.000000e+00> : vector<16xf32>
    %172 = vector.multi_reduction <add>, %171, %cst_57 [1] : vector<16x16xf32> to vector<16xf32>
    %173 = vector.shape_cast %172 : vector<16xf32> to vector<16x1xf32>
    %174 = tpu.reciprocal %173 {approx = true} : vector<16x1xf32> -> vector<16x1xf32>
    %175 = vector.broadcast %174 : vector<16x1xf32> to vector<16x16xf32>
    %176 = arith.mulf %171, %175 : vector<16x16xf32>
    %177 = vector.extract_strided_slice %128 {offsets = [0, 24], sizes = [16, 8], strides = [1, 1]} : vector<16x32xf32> to vector<16x8xf32>
    %cst_58 = arith.constant dense<0.000000e+00> : vector<16x8xf32>
    %178 = tpu.matmul %176, %177, %cst_58 {dimension_numbers = #tpu.dot_dimension_numbers<[1], [0], [0], [1], [0, 0, 1, 1], [], []>} : vector<16x16xf32>, vector<16x8xf32>, vector<16x8xf32> -> vector<16x8xf32>
    %179 = tpu.concatenate %142, %154, %166, %178 in 1 : vector<16x8xf32>, vector<16x8xf32>, vector<16x8xf32>, vector<16x8xf32> -> vector<16x32xf32>
    %cst_59 = arith.constant dense<0.000000e+00> : vector<16x32xf32>
    %180 = tpu.matmul %179, %129, %cst_59 {dimension_numbers = #tpu.dot_dimension_numbers<[1], [0], [0], [1], [0, 0, 1, 1], [], []>} : vector<16x32xf32>, vector<32x32xf32>, vector<16x32xf32> -> vector<16x32xf32>
    %181 = vector.broadcast %130 : vector<1x32xf32> to vector<16x32xf32>
    %182 = arith.addf %180, %181 : vector<16x32xf32>
    %183 = arith.addf %91, %182 : vector<16x32xf32>
    %c4 = arith.constant 4 : index
    %c0_60 = arith.constant 0 : index
    %184 = vector.load %arg3[%c4, %c0_60] : memref<16x128xf32, #tpu.memory_space<vmem>>, vector<1x32xf32>
    %c5 = arith.constant 5 : index
    %c0_61 = arith.constant 0 : index
    %185 = vector.load %arg3[%c5, %c0_61] : memref<16x128xf32, #tpu.memory_space<vmem>>, vector<1x32xf32>
    %cst_62 = arith.constant dense<0.000000e+00> : vector<16xf32>
    %186 = vector.multi_reduction <add>, %183, %cst_62 [1] : vector<16x32xf32> to vector<16xf32>
    %187 = vector.shape_cast %186 : vector<16xf32> to vector<16x1xf32>
    %cst_63 = arith.constant 3.200000e+01 : f32
    %188 = vector.broadcast %cst_63 : f32 to vector<16x1xf32>
    %189 = arith.divf %187, %188 : vector<16x1xf32>
    %190 = vector.broadcast %189 : vector<16x1xf32> to vector<16x32xf32>
    %191 = arith.subf %183, %190 : vector<16x32xf32>
    %192 = arith.mulf %191, %191 : vector<16x32xf32>
    %cst_64 = arith.constant dense<0.000000e+00> : vector<16xf32>
    %193 = vector.multi_reduction <add>, %192, %cst_64 [1] : vector<16x32xf32> to vector<16xf32>
    %194 = vector.shape_cast %193 : vector<16xf32> to vector<16x1xf32>
    %cst_65 = arith.constant 0.0322580636 : f32
    %195 = vector.broadcast %cst_65 : f32 to vector<16x1xf32>
    %196 = arith.mulf %194, %195 : vector<16x1xf32>
    %197 = math.sqrt %196 : vector<16x1xf32>
    %cst_66 = arith.constant 9.99999997E-7 : f32
    %198 = vector.broadcast %cst_66 : f32 to vector<16x1xf32>
    %199 = arith.addf %197, %198 : vector<16x1xf32>
    %200 = tpu.reciprocal %199 : vector<16x1xf32> -> vector<16x1xf32>
    %201 = vector.broadcast %189 : vector<16x1xf32> to vector<16x32xf32>
    %202 = arith.subf %183, %201 : vector<16x32xf32>
    %203 = vector.broadcast %184 : vector<1x32xf32> to vector<16x32xf32>
    %204 = arith.mulf %203, %202 : vector<16x32xf32>
    %205 = vector.broadcast %200 : vector<16x1xf32> to vector<16x32xf32>
    %206 = arith.mulf %204, %205 : vector<16x32xf32>
    %207 = vector.broadcast %185 : vector<1x32xf32> to vector<16x32xf32>
    %208 = arith.addf %206, %207 : vector<16x32xf32>
    %c0_67 = arith.constant 0 : index
    %c640 = arith.constant 640 : index
    %209 = vector.load %arg4[%c0_67, %c640] : memref<32x768xf32, #tpu.memory_space<vmem>>, vector<32x64xf32>
    %cst_68 = arith.constant dense<0.000000e+00> : vector<16x64xf32>
    %210 = tpu.matmul %208, %209, %cst_68 {dimension_numbers = #tpu.dot_dimension_numbers<[1], [0], [0], [1], [0, 0, 1, 1], [], []>} : vector<16x32xf32>, vector<32x64xf32>, vector<16x64xf32> -> vector<16x64xf32>
    %c11 = arith.constant 11 : index
    %c0_69 = arith.constant 0 : index
    %211 = vector.load %arg3[%c11, %c0_69] : memref<16x128xf32, #tpu.memory_space<vmem>>, vector<1x64xf32>
    %212 = vector.broadcast %211 : vector<1x64xf32> to vector<16x64xf32>
    %213 = arith.addf %210, %212 : vector<16x64xf32>
    %cst_70 = arith.constant 0.000000e+00 : f32
    %214 = vector.broadcast %cst_70 : f32 to vector<16x64xf32>
    %215 = arith.maximumf %213, %214 : vector<16x64xf32>
    %c0_71 = arith.constant 0 : index
    %c0_72 = arith.constant 0 : index
    %216 = vector.load %arg5[%c0_71, %c0_72] : memref<64x32xf32, #tpu.memory_space<vmem>>, vector<64x32xf32>
    %cst_73 = arith.constant dense<0.000000e+00> : vector<16x32xf32>
    %217 = tpu.matmul %215, %216, %cst_73 {dimension_numbers = #tpu.dot_dimension_numbers<[1], [0], [0], [1], [0, 0, 1, 1], [], []>} : vector<16x64xf32>, vector<64x32xf32>, vector<16x32xf32> -> vector<16x32xf32>
    %c12 = arith.constant 12 : index
    %c0_74 = arith.constant 0 : index
    %218 = vector.load %arg3[%c12, %c0_74] : memref<16x128xf32, #tpu.memory_space<vmem>>, vector<1x32xf32>
    %219 = vector.broadcast %218 : vector<1x32xf32> to vector<16x32xf32>
    %220 = arith.addf %217, %219 : vector<16x32xf32>
    %221 = arith.addf %183, %220 : vector<16x32xf32>
    %c0_75 = arith.constant 0 : index
    %c0_76 = arith.constant 0 : index
    %222 = vector.load %arg6[%c0_75, %c0_76] : memref<16x32xf32, #tpu.memory_space<vmem>>, vector<16x32xf32>
    tpu.vector_store %arg6[%c0_75, %c0_76], %221 {strides = array<i32>} : memref<16x32xf32, #tpu.memory_space<vmem>>, vector<16x32xf32>,
    return
  }
}

</mosaic_0001>

<bundles_post_ra>
// kernel: decoder_layer.1
= control target key start
LH: loop header
LB: loop body
LE: loop exit
PB: predicated region body
PF: predicated region fallthrough
CT: control target
= control target key end

     0   :  { %11 = vsyncpa [#allocation3], 0  ;;  %s2009_s0 = inlined_call_operand.vmem [shape: f32[16,32], index: 0, kind: input, shape index: {}]   ;;  %s2010_s1 = inlined_call_operand.vmem [shape: f32[16,32], index: 1, kind: input, shape index: {}]   ;;  %s2011_s2 = inlined_call_operand.vmem [shape: f32[32,16], index: 2, kind: input, shape index: {}]   ;;  %s2012_s3 = inlined_call_operand.vmem [shape: f32[16,128], index: 3, kind: input, shape index: {}]   ;;  %s2013_s4 = inlined_call_operand.hbm [shape: f32[32,768], index: 4, kind: input, shape index: {}]   ;;  %s2014_s5 = inlined_call_operand.vmem [shape: f32[64,32], index: 5, kind: input, shape index: {}]   ;;  %s2015_s6 = inlined_call_operand.hbm [shape: f32[16,32], index: 6, kind: output, shape index: {}]  }
   0x1   :  { %12 = vsyncpa [#allocation4], 0  ;;  %s25_s23 = sshll.u32 %s2013_s4, 4  ;;  %s1628_s24 = smov [#allocation2]   ;;  %s26_s23 = int_to_ptr.hbm [resolvable:$true] %s25_s23 }
   0x2   :  { %s27_s25 = sshll.u32 %s1628_s24, 4  ;;  %s1629_s26 = smov 768   ;;  %s28_s25 = int_to_ptr.vmem [resolvable:$true] %s27_s25 }
   0x3   :  { %s1630_s27 = smov 48  }
   0x4   :  { %33 = dma.hbm_to_vmem [thread:$0]  %s26_s23, 3072, %s28_s25, [#allocation3], %s1629_s26, %s1629_s26, %s1630_s27  }
   0x5   :  { %1624 = dma.done.wait [#allocation3], 3072  }
   0x6   :  { %1625 = vsyncadd [#allocation3], 4294964224  ;;  %vm50_vm0 = vcmask 261120   ;;  %v1689_v0 = vld [vmem:[%s2009_s0 + $0x8] sm:$0xff]  ;;  %v1696_v2 = vld [vmem:[%s2009_s0] sm:$0xff]  ;;  %v1631_v4 = vmov 32.0  }
   0x7   :  { %v54_v1 = vsel %vm50_vm0, %v1689_v0, 0.0  ;;  %v51_v3 = vsel %vm50_vm0, %v1696_v2, 0.0  ;;  %1486 = vrcp.f32 %v1631_v4  ;;  %v143_v21 = vld [vmem:[#allocation2 + $0x90] sm:$0xff]  ;;  %v142_v22 = vld [vmem:[#allocation2 + $0x60] sm:$0xff]  ;;  %s1632_s12 = smov 96   ;;  %s1633_s13 = smov 88  }
   0x8   :  { %55 = vadd.xlane.f32.xlu0 %v54_v1  ;;  %1410 = vmatpush.msra.mxu3 %v143_v21  ;;  %v141_v23 = vld [vmem:[#allocation2 + $0x30] sm:$0xff]  ;;  %v140_v25 = vld [vmem:[#allocation2] sm:$0xff]  ;;  %s1634_s14 = smov 72   ;;  %s1635_s15 = smov 80   ;;  %vm186_vm14 = vcmask 64512   ;;  %vm222_vm15 = vcmask 130048  }
   0x9   :  { %164 = vmatpush.msra.mxu0 %v143_v21  ;;  %v1473_v55 = vld [vmem:[%s2012_s3] ss:$0 sm:$0xff]  ;;  %v1474_v63 = vld [vmem:[%s2012_s3 + $0x1] ss:$0 sm:$0xff]  ;;  %s1636_s16 = smov 120   ;;  %s1637_s17 = smov 112  }
   0xa   :  { %1411 = vmatpush.msra.mxu3 %v142_v22  ;;  %s1638_s18 = smov 64   ;;  %s1639_s19 = smov 104  }
   0xb   :  { %165 = vmatpush.msra.mxu0 %v142_v22  ;;  %s1640_s24 = smov 56   ;;  %s1641_s25 = smov 40  }
   0xc   :  { %1412 = vmatpush.msra.mxu3 %v141_v23  ;;  %s1642_s26 = smov 8   ;;  %s1644_s28 = smov 24  }
   0xd   :  { %v1487_v5 = vpop.eup %1486  ;;  %166 = vmatpush.msra.mxu0 %v141_v23 }
   0xe   :  { %v58_v6 = vmul.f32 32.0, %v1487_v5  ;;  %vm62_vm1 = vweird.f32 %v1487_v5  ;;  %1413 = vmatpush.msra.mxu3 %v140_v25 }
   0xf   :  { %167 = vmatpush.msra.mxu0 %v140_v25 }
  0x10   :  { %52 = vadd.xlane.f32.xlu0 %v51_v3  ;;  %v59_v7 = vsub.f32 1.0, %v58_v6 }
  0x12   :  { %v60_v8 = vmul.f32 %v1487_v5, %v59_v7 }
  0x14   :  { %v61_v9 = vadd.f32 %v1487_v5, %v60_v8 }
  0x16   :  { %v1700_v10 = vsel %vm62_vm1, %v1487_v5, %v61_v9  ;;  %vm560_vm1 = vcmask 195584  }
  0x7b   :  { %v56_v11 = vpop.xlane.xlu0 %55 }
  0x7c   :  { %v65_v12 = vmul.f32 %v1700_v10, %v56_v11 }
  0x7e   :  { %v1704_v13 = vsub.f32 %v1689_v0, %v65_v12 }
  0x80   :  { %v69_v14 = vmul.f32 %v1704_v13, %v1704_v13  ;;  %v134_v61 = vmul.f32 %v1473_v55, %v1704_v13 }
  0x82   :  { %v73_v15 = vsel %vm50_vm0, %v69_v14, 0.0 }
  0x83   :  { %74 = vadd.xlane.f32.xlu1 %v73_v15  ;;  %v53_v16 = vpop.xlane.xlu0 %52 }
  0x84   :  { %v64_v17 = vmul.f32 %v1700_v10, %v53_v16 }
  0x86   :  { %v1711_v18 = vsub.f32 %v1696_v2, %v64_v17 }
  0x88   :  { %v68_v19 = vmul.f32 %v1711_v18, %v1711_v18  ;;  %v133_v13 = vmul.f32 %v1473_v55, %v1711_v18 }
  0x8a   :  { %v70_v20 = vsel %vm50_vm0, %v68_v19, 0.0  ;;  %v1475_v19 = vld [vmem:[%s2012_s3 + $0x6] ss:$0 sm:$0xff] }
  0x8b   :  { %71 = vadd.xlane.f32.xlu1 %v70_v20 }
  0xf6   :  { %v75_v24 = vpop.xlane.xlu1 %74 }
  0xf7   :  { %v77_v26 = vmul.f32 0.032258064, %v75_v24 }
  0xf9   :  { %1488 = vrsqrt.f32 %v77_v26  ;;  %vm97_vm2 = vcmp.eq.f32.partialorder %v77_v26, inf  ;;  %v100_v39 = vand.u32 2147483648, %v77_v26  ;;  %vm99_vm3 = vcmp.eq.f32.partialorder %v77_v26, 0.0 }
  0xfe   :  { %v72_v27 = vpop.xlane.xlu1 %71 }
  0xff   :  { %v1489_v28 = vpop.eup %1488  ;;  %v76_v29 = vmul.f32 0.032258064, %v72_v27 }
 0x100   :  { %v91_v30 = vmul.f32 %v1489_v28, %v77_v26 }
 0x101   :  { %1490 = vrsqrt.f32 %v76_v29  ;;  %vm85_vm4 = vcmp.eq.f32.partialorder %v76_v29, inf  ;;  %v88_v47 = vand.u32 2147483648, %v76_v29  ;;  %vm87_vm5 = vcmp.eq.f32.partialorder %v76_v29, 0.0 }
 0x102   :  { %v92_v31 = vmul.f32 %v1489_v28, %v91_v30 }
 0x104   :  { %v93_v32 = vmul.f32 0.5, %v92_v31 }
 0x106   :  { %v94_v33 = vsub.f32 1.5, %v93_v32 }
 0x107   :  { %v1491_v34 = vpop.eup %1490 }
 0x108   :  { %v95_v35 = vmul.f32 %v1489_v28, %v94_v33  ;;  %v79_v36 = vmul.f32 %v1491_v34, %v76_v29 }
 0x10a   :  { %v96_v37 = vmul.f32 %v95_v35, %v77_v26  ;;  %v80_v38 = vmul.f32 %v1491_v34, %v79_v36 }
 0x10c   :  { %v81_v40 = vmul.f32 0.5, %v80_v38  ;;  %v98_v41 = vsel %vm97_vm2, %v77_v26, %v96_v37 }
 0x10d   :  { %v101_v42 = vsel %vm99_vm3, %v100_v39, %v98_v41  ;;  %v44_v41 = vld [vmem:[%s2011_s2] sm:$0xff] }
 0x10e   :  { %v82_v43 = vsub.f32 1.5, %v81_v40  ;;  %v103_v44 = vadd.f32 1e-06, %v101_v42 }
 0x110   :  { %v83_v45 = vmul.f32 %v1491_v34, %v82_v43  ;;  %1492 = vrcp.f32 %v103_v44  ;;  %v129_v54 = vand.u32 2147483648, %v103_v44  ;;  %v127_v57 = vand.u32 2147483647, %v103_v44 }
 0x111   :  { %vm123_vm7 = vweird.f32 %v103_v44 }
 0x112   :  { %v84_v46 = vmul.f32 %v83_v45, %v76_v29  ;;  %v130_v60 = vor.u32 1.1754944e-38, %v129_v54  ;;  %vm128_vm9 = vcmp.eq.f32.partialorder %v127_v57, 8.507059e+37  ;;  %v45_v45 = vld [vmem:[%s2011_s2 + $0x8] sm:$0xff] }
 0x114   :  { %v86_v48 = vsel %vm85_vm4, %v76_v29, %v84_v46 }
 0x115   :  { %v89_v49 = vsel %vm87_vm5, %v88_v47, %v86_v48 }
 0x116   :  { %v1493_v50 = vpop.eup %1492  ;;  %v102_v51 = vadd.f32 1e-06, %v89_v49 }
 0x117   :  { %v119_v52 = vmul.f32 %v1493_v50, %v103_v44  ;;  %vm124_vm6 = vweird.f32 %v1493_v50 }
 0x118   :  { %1494 = vrcp.f32 %v102_v51  ;;  %vm125_vm8 = vmor %vm123_vm7, %vm124_vm6  ;;  %v115_v6 = vand.u32 2147483648, %v102_v51  ;;  %v113_v9 = vand.u32 2147483647, %v102_v51  ;;  %vm109_vm11 = vweird.f32 %v102_v51 }
 0x119   :  { %v120_v53 = vsub.f32 1.0, %v119_v52 }
 0x11a   :  { %v116_v12 = vor.u32 1.1754944e-38, %v115_v6  ;;  %vm114_vm13 = vcmp.eq.f32.partialorder %v113_v9, 8.507059e+37 }
 0x11b   :  { %v121_v56 = vmul.f32 %v1493_v50, %v120_v53 }
 0x11d   :  { %v122_v58 = vadd.f32 %v1493_v50, %v121_v56 }
 0x11e   :  { %v1495_v59 = vpop.eup %1494 }
 0x11f   :  { %v126_v62 = vsel %vm125_vm8, %v1493_v50, %v122_v58  ;;  %v105_v1 = vmul.f32 %v1495_v59, %v102_v51  ;;  %vm110_vm10 = vweird.f32 %v1495_v59 }
 0x120   :  { %v131_v3 = vsel %vm128_vm9, %v130_v60, %v126_v62  ;;  %vm111_vm12 = vmor %vm109_vm11, %vm110_vm10 }
 0x121   :  { %v136_v4 = vmul.f32 %v134_v61, %v131_v3  ;;  %v106_v5 = vsub.f32 1.0, %v105_v1 }
 0x123   :  { %v139_v7 = vadd.f32 %v1474_v63, %v136_v4  ;;  %v107_v8 = vmul.f32 %v1495_v59, %v106_v5 }
 0x125   :  { %1349 = vmatmul.msk.f32.vlgmr.msra.gmra.mxu3 %vm50_vm0, %v139_v7  ;;  %v108_v11 = vadd.f32 %v1495_v59, %v107_v8 }
 0x127   :  { %v112_v14 = vsel %vm111_vm12, %v1495_v59, %v108_v11 }
 0x128   :  { %v117_v15 = vsel %vm114_vm13, %v116_v12, %v112_v14 }
 0x129   :  { %v135_v16 = vmul.f32 %v133_v13, %v117_v15 }
 0x12b   :  { %v138_v17 = vadd.f32 %v1474_v63, %v135_v16 }
 0x12d   :  { %1348 = vmatmul.msk.f32.vlgmr.msra.gmra.mxu0 %vm50_vm0, %v138_v17 }
 0x1a8   :  { %v172_v20 = vpop.f32.mrf.mxu3 }
 0x1a9   :  { %v173_v21 = vadd.f32 %v1475_v19, %v172_v20 }
 0x1aa   :  { %v169_v22 = vpop.f32.mrf.mxu0 }
 0x1ab   :  { %v170_v23 = vadd.f32 %v1475_v19, %v169_v22  ;;  %184 = vrot.lane.b32.xlu2 %v173_v21, %s1632_s12  ;;  %274 = vrot.lane.b32.xlu0 %v173_v21, %s1633_s13 }
 0x1ad   :  { %272 = vrot.lane.b32.xlu1 %v170_v23, %s1633_s13  ;;  %v1740_v18 = vpack.i.bf16 %v170_v23, %v173_v21 }
 0x1b3   :  { %448 = vrot.lane.b32.xlu0 %v170_v23, %s1634_s14  ;;  %182 = vrot.lane.b32.xlu2 %v170_v23, %s1632_s12 }
 0x1b5   :  { %362 = vrot.lane.b32.xlu1 %v173_v21, %s1635_s15 }
 0x1bb   :  { %360 = vrot.lane.b32.xlu0 %v170_v23, %s1635_s15  ;;  %268 = vrot.lane.b32.xlu2 %v170_v23, %s1636_s16 }
 0x1bd   :  { %356 = vrot.lane.b32.xlu1 %v170_v23, %s1637_s17 }
 0x1c3   :  { %358 = vrot.lane.b32.xlu0 %v173_v21, %s1637_s17  ;;  %270 = vrot.lane.b32.xlu2 %v173_v21, %s1636_s16 }
 0x1c5   :  { %1434 = vrot.lane.b32.xlu1 %v1740_v18, %s1638_s18 }
 0x1cb   :  { %450 = vrot.lane.b32.xlu2 %v173_v21, %s1634_s14 }
 0x1d3   :  { %444 = vrot.lane.b32.xlu2 %v170_v23, %s1639_s19 }
 0x1db   :  { %446 = vrot.lane.b32.xlu2 %v173_v21, %s1639_s19 }
 0x205   :  { %v185_v24 = vpop.permute.xlu2 %184 }
 0x206   :  { %1350 = vmatpush.xpose.msk.msra.mxu1 %vm186_vm14, %v185_v24 }
 0x20d   :  { %v183_v25 = vpop.permute.xlu2 %182 }
 0x20e   :  { %1351 = vmatpush.xpose.msk.msra.mxu1 %vm186_vm14, %v183_v25 }
 0x211   :  { %1352 = vmatmul.msk.f32.vlgmr.msra.gmra.mxu1 %vm186_vm14, %v170_v23 }
 0x215   :  { %v269_v26 = vpop.permute.xlu2 %268 }
 0x219   :  { %1353 = vmatmul.msk.f32.gmra.mxu1 %vm186_vm14, %v173_v21 }
 0x21d   :  { %v271_v27 = vpop.permute.xlu2 %270  ;;  %v275_v28 = vpop.permute.xlu0 %274 }
 0x21e   :  { %1356 = vmatpush.xpose.msk.msrb.mxu3 %vm186_vm14, %v275_v28 }
 0x21f   :  { %v273_v29 = vpop.permute.xlu1 %272 }
 0x222   :  { %1357 = vmatpush.xpose.msk.msrb.mxu3 %vm186_vm14, %v273_v29 }
 0x225   :  { %v451_v30 = vpop.permute.xlu2 %450  ;;  %1358 = vmatmul.msk.f32.vlgmr.msrb.gmra.mxu3 %vm186_vm14, %v269_v26  ;;  %v449_v31 = vpop.permute.xlu0 %448 }
 0x226   :  { %1368 = vmatpush.xpose.msk.msra.mxu3 %vm186_vm14, %v451_v30 }
 0x227   :  { %v363_v32 = vpop.permute.xlu1 %362 }
 0x228   :  { %1362 = vmatpush.xpose.msk.msrb.mxu0 %vm186_vm14, %v363_v32 }
 0x22a   :  { %1369 = vmatpush.xpose.msk.msra.mxu3 %vm186_vm14, %v449_v31 }
 0x22d   :  { %1359 = vmatmul.msk.f32.gmra.mxu3 %vm186_vm14, %v271_v27  ;;  %v361_v33 = vpop.permute.xlu0 %360  ;;  %v445_v35 = vpop.permute.xlu2 %444 }
 0x22e   :  { %1363 = vmatpush.xpose.msk.msrb.mxu0 %vm186_vm14, %v361_v33 }
 0x22f   :  { %v357_v34 = vpop.permute.xlu1 %356 }
 0x231   :  { %1364 = vmatmul.msk.f32.vlgmr.msrb.gmra.mxu0 %vm186_vm14, %v357_v34 }
 0x235   :  { %1370 = vmatmul.msk.f32.vlgmr.msra.gmra.mxu3 %vm186_vm14, %v445_v35  ;;  %v359_v37 = vpop.permute.xlu0 %358  ;;  %v447_v40 = vpop.permute.xlu2 %446 }
 0x237   :  { %v1435_v36 = vpop.permute.xlu1 %1434 }
 0x238   :  { %v1436_v38 = vunpack.i.l.bf16 %v1435_v36  ;;  %v1437_v39 = vunpack.i.h.bf16 %v1435_v36 }
 0x239   :  { %1365 = vmatmul.msk.f32.gmra.mxu0 %vm186_vm14, %v359_v37 }
 0x23a   :  { %259 = vmatpush.msra.mxu2 %v1436_v38 }
 0x23c   :  { %260 = vmatpush.msra.mxu2 %v1437_v39 }
 0x23d   :  { %1371 = vmatmul.msk.f32.gmra.mxu3 %vm186_vm14, %v447_v40 }
 0x28e   :  { %v212_v42 = vpop.f32.mrf.mxu1 }
 0x28f   :  { %v213_v43 = vadd.f32 %v212_v42, %v44_v41 }
 0x291   :  { %v218_v44 = vmul.f32 1.442695, %v213_v43 }
 0x293   :  { %1496 = vpow2.f32 %v218_v44 }
 0x296   :  { %v215_v46 = vpop.f32.mrf.mxu1 }
 0x297   :  { %v216_v47 = vadd.f32 %v215_v46, %v45_v45 }
 0x299   :  { %v1497_v48 = vpop.eup %1496  ;;  %v220_v49 = vmul.f32 1.442695, %v216_v47 }
 0x29a   :  { %v223_v50 = vsel %vm222_vm15, %v1497_v48, 0.0 }
 0x29b   :  { %1498 = vpow2.f32 %v220_v49  ;;  %224 = vadd.xlane.f32.xlu2 %v223_v50 }
 0x2a1   :  { %v1769_v51 = vpop.eup %1498 }
 0x2a2   :  { %v226_v52 = vsel %vm222_vm15, %v1769_v51, 0.0 }
 0x2a3   :  { %227 = vadd.xlane.f32.xlu0 %v226_v52 }
 0x2a8   :  { %v301_v53 = vpop.f32.mrf.mxu3 }
 0x2a9   :  { %v302_v54 = vadd.f32 %v301_v53, %v44_v41 }
 0x2ab   :  { %v307_v55 = vmul.f32 1.442695, %v302_v54 }
 0x2ad   :  { %1500 = vpow2.f32 %v307_v55 }
 0x2ae   :  { %v389_v56 = vpop.f32.mrf.mxu0 }
 0x2af   :  { %v390_v60 = vadd.f32 %v389_v56, %v44_v41 }
 0x2b0   :  { %v304_v57 = vpop.f32.mrf.mxu3 }
 0x2b1   :  { %v305_v58 = vadd.f32 %v304_v57, %v45_v45  ;;  %v395_v63 = vmul.f32 1.442695, %v390_v60 }
 0x2b3   :  { %v1773_v59 = vpop.eup %1500  ;;  %v309_v61 = vmul.f32 1.442695, %v305_v58  ;;  %1439 = vrot.lane.b32.xlu2 %v1740_v18, %s1640_s24 }
 0x2b4   :  { %v311_v62 = vsel %vm222_vm15, %v1773_v59, 0.0 }
 0x2b5   :  { %1502 = vpow2.f32 %v309_v61  ;;  %312 = vadd.xlane.f32.xlu1 %v311_v62 }
 0x2b6   :  { %1504 = vpow2.f32 %v395_v63  ;;  %v392_v7 = vpop.f32.mrf.mxu0  ;;  %v178_v63 = vld [vmem:[#allocation2 + $0x98] sm:$0xff] }
 0x2b7   :  { %v393_v13 = vadd.f32 %v392_v7, %v45_v45  ;;  %582 = vmatpush.msra.mxu0 %v178_v63 }
 0x2b8   :  { %v477_v1 = vpop.f32.mrf.mxu3 }
 0x2b9   :  { %v478_v3 = vadd.f32 %v477_v1, %v44_v41  ;;  %v397_v17 = vmul.f32 1.442695, %v393_v13  ;;  %v177_v1 = vld [vmem:[#allocation2 + $0x68] sm:$0xff] }
 0x2ba   :  { %583 = vmatpush.msra.mxu0 %v177_v1  ;;  %v1477_v1 = vld [vmem:[%s2012_s3 + $0x2] ss:$0 sm:$0xff] }
 0x2bb   :  { %v1503_v4 = vpop.eup %1502  ;;  %v483_v5 = vmul.f32 1.442695, %v478_v3  ;;  %1449 = vrot.lane.b32.xlu2 %v1740_v18, %s1630_s27  ;;  %s1643_s27 = smov 16   ;;  %v176_v3 = vld [vmem:[#allocation2 + $0x38] sm:$0xff] }
 0x2bc   :  { %v314_v6 = vsel %vm222_vm15, %v1503_v4, 0.0  ;;  %v1505_v9 = vpop.eup %1504  ;;  %584 = vmatpush.msra.mxu0 %v176_v3 }
 0x2bd   :  { %1506 = vpow2.f32 %v483_v5  ;;  %315 = vadd.xlane.f32.xlu0 %v314_v6  ;;  %v399_v16 = vsel %vm222_vm15, %v1505_v9, 0.0 }
 0x2c0   :  { %v480_v8 = vpop.f32.mrf.mxu3 }
 0x2c1   :  { %v481_v11 = vadd.f32 %v480_v8, %v45_v45 }
 0x2c3   :  { %v1781_v12 = vpop.eup %1506  ;;  %v485_v14 = vmul.f32 1.442695, %v481_v11 }
 0x2c4   :  { %v487_v15 = vsel %vm222_vm15, %v1781_v12, 0.0 }
 0x2c5   :  { %1508 = vpow2.f32 %v485_v14  ;;  %488 = vadd.xlane.f32.xlu1 %v487_v15  ;;  %400 = vadd.xlane.f32.xlu0 %v399_v16 }
 0x2c6   :  { %1510 = vpow2.f32 %v397_v17 }
 0x2cb   :  { %v1509_v19 = vpop.eup %1508 }
 0x2cc   :  { %v490_v20 = vsel %vm222_vm15, %v1509_v19, 0.0  ;;  %v1511_v21 = vpop.eup %1510 }
 0x2cd   :  { %491 = vadd.xlane.f32.xlu0 %v490_v20  ;;  %v402_v22 = vsel %vm222_vm15, %v1511_v21, 0.0 }
 0x2d5   :  { %403 = vadd.xlane.f32.xlu0 %v402_v22 }
 0x2de   :  { %1444 = vrot.lane.b32.xlu1 %v1740_v18, %s1641_s25 }
 0x30e   :  { %v225_v23 = vpop.xlane.xlu2 %224 }
 0x30f   :  { %1512 = vrcp.f32 %v225_v23 }
 0x315   :  { %v1513_v24 = vpop.eup %1512 }
 0x316   :  { %v1440_v25 = vpop.permute.xlu2 %1439  ;;  %v228_v26 = vpop.xlane.xlu0 %227  ;;  %v231_v27 = vmul.f32 %v1513_v24, %v1497_v48 }
 0x317   :  { %1514 = vrcp.f32 %v228_v26  ;;  %v1441_v28 = vunpack.i.l.bf16 %v1440_v25  ;;  %v1442_v29 = vunpack.i.h.bf16 %v1440_v25 }
 0x318   :  { %1354 = vmatmul.msk.f32.vlgmr.msra.gmra.mxu2 %vm222_vm15, %v231_v27 }
 0x319   :  { %347 = vmatpush.msrb.mxu2 %v1441_v28 }
 0x31b   :  { %348 = vmatpush.msrb.mxu2 %v1442_v29 }
 0x31d   :  { %v1515_v30 = vpop.eup %1514 }
 0x31e   :  { %v1450_v31 = vpop.permute.xlu2 %1449  ;;  %v232_v32 = vmul.f32 %v1515_v30, %v1769_v51 }
 0x31f   :  { %v1451_v33 = vunpack.i.l.bf16 %v1450_v31  ;;  %v1452_v18 = vunpack.i.h.bf16 %v1450_v31 }
 0x320   :  { %1355 = vmatmul.msk.f32.gmra.mxu2 %vm222_vm15, %v232_v32  ;;  %v717_v32 = vld [vmem:[#allocation2 + $0xa8] sm:$0xff] }
 0x321   :  { %435 = vmatpush.msrb.mxu1 %v1451_v33  ;;  %v716_v33 = vld [vmem:[#allocation2 + $0x78] sm:$0xff]  ;;  %738 = vmatpush.msrb.mxu3 %v717_v32 }
 0x323   :  { %436 = vmatpush.msrb.mxu1 %v1452_v18  ;;  %739 = vmatpush.msrb.mxu3 %v716_v33 }
 0x328   :  { %v313_v34 = vpop.xlane.xlu1 %312 }
 0x329   :  { %1516 = vrcp.f32 %v313_v34 }
 0x32f   :  { %v1517_v35 = vpop.eup %1516 }
 0x330   :  { %v316_v36 = vpop.xlane.xlu0 %315  ;;  %v319_v37 = vmul.f32 %v1517_v35, %v1773_v59 }
 0x331   :  { %1518 = vrcp.f32 %v316_v36 }
 0x332   :  { %1360 = vmatmul.msk.f32.vlgmr.msrb.gmra.mxu2 %vm222_vm15, %v319_v37 }
 0x337   :  { %v1519_v38 = vpop.eup %1518 }
 0x338   :  { %v401_v39 = vpop.xlane.xlu0 %400  ;;  %v320_v40 = vmul.f32 %v1519_v38, %v1503_v4  ;;  %v489_v44 = vpop.xlane.xlu1 %488  ;;  %v175_v4 = vld [vmem:[#allocation2 + $0x8] sm:$0xff]  ;;  %v714_v38 = vld [vmem:[#allocation2 + $0x18] sm:$0xff] }
 0x339   :  { %1520 = vrcp.f32 %v401_v39  ;;  %585 = vmatpush.msra.mxu0 %v175_v4  ;;  %v42_v39 = vld [vmem:[%s2010_s1] sm:$0xff] }
 0x33a   :  { %1361 = vmatmul.msk.f32.gmra.mxu2 %vm222_vm15, %v320_v40  ;;  %v43_v40 = vld [vmem:[%s2010_s1 + $0x8] sm:$0xff] }
 0x33f   :  { %v1521_v41 = vpop.eup %1520 }
 0x340   :  { %v492_v42 = vpop.xlane.xlu0 %491  ;;  %v407_v43 = vmul.f32 %v1521_v41, %v1505_v9 }
 0x342   :  { %1366 = vmatmul.msk.f32.vlgmr.msrb.gmra.mxu1 %vm222_vm15, %v407_v43  ;;  %v682_v43 = vld [vmem:[#allocation2 + $0xa0] sm:$0xff] }
 0x343   :  { %703 = vmatpush.msra.mxu1 %v682_v43 }
 0x348   :  { %v404_v45 = vpop.xlane.xlu0 %403 }
 0x349   :  { %1522 = vrcp.f32 %v404_v45 }
 0x34a   :  { %1524 = vrcp.f32 %v489_v44 }
 0x34b   :  { %1526 = vrcp.f32 %v492_v42 }
 0x34f   :  { %v1523_v46 = vpop.eup %1522 }
 0x350   :  { %v1445_v47 = vpop.permute.xlu1 %1444  ;;  %v408_v48 = vmul.f32 %v1523_v46, %v1511_v21  ;;  %v1525_v49 = vpop.eup %1524  ;;  %v681_v46 = vld [vmem:[#allocation2 + $0x70] sm:$0xff] }
 0x351   :  { %v1446_v50 = vunpack.i.l.bf16 %v1445_v47  ;;  %v1447_v51 = vunpack.i.h.bf16 %v1445_v47  ;;  %v495_v52 = vmul.f32 %v1525_v49, %v1781_v12  ;;  %v1527_v53 = vpop.eup %1526  ;;  %704 = vmatpush.msra.mxu1 %v681_v46 }
 0x352   :  { %1367 = vmatmul.msk.f32.gmra.mxu1 %vm222_vm15, %v408_v48  ;;  %v496_v54 = vmul.f32 %v1527_v53, %v1509_v19  ;;  %v1476_v19 = vld [vmem:[%s2012_s3 + $0x7] ss:$0 sm:$0xff] }
 0x353   :  { %523 = vmatpush.msra.mxu2 %v1446_v50  ;;  %v680_v48 = vld [vmem:[#allocation2 + $0x40] sm:$0xff]  ;;  %v679_v50 = vld [vmem:[#allocation2 + $0x10] sm:$0xff] }
 0x354   :  { %705 = vmatpush.msra.mxu1 %v680_v48 }
 0x355   :  { %524 = vmatpush.msra.mxu2 %v1447_v51 }
 0x356   :  { %1372 = vmatmul.msk.f32.vlgmr.msra.gmra.mxu2 %vm222_vm15, %v495_v52  ;;  %706 = vmatpush.msra.mxu1 %v679_v50 }
 0x35e   :  { %1373 = vmatmul.msk.f32.gmra.mxu2 %vm222_vm15, %v496_v54 }
 0x39b   :  { %v262_v55 = vpop.f32.mrf.mxu2 }
 0x3a3   :  { %v265_v56 = vpop.f32.mrf.mxu2 }
 0x3b5   :  { %v350_v57 = vpop.f32.mrf.mxu2 }
 0x3b6   :  { %534 = vrot.lane.b32.xlu2 %v350_v57, %s1642_s26 }
 0x3bd   :  { %v353_v58 = vpop.f32.mrf.mxu2 }
 0x3be   :  { %536 = vrot.lane.b32.xlu1 %v353_v58, %s1642_s26 }
 0x3bf   :  { %v438_v59 = vpop.f32.mrf.mxu1 }
 0x3c0   :  { %542 = vrot.lane.b32.xlu0 %v438_v59, %s1643_s27 }
 0x3cf   :  { %v441_v61 = vpop.f32.mrf.mxu1 }
 0x3d9   :  { %v526_v60 = vpop.f32.mrf.mxu2 }
 0x3da   :  { %550 = vrot.lane.b32.xlu2 %v526_v60, %s1644_s28 }
 0x3e1   :  { %v529_v62 = vpop.f32.mrf.mxu2 }
 0x3e2   :  { %552 = vrot.lane.b32.xlu1 %v529_v62, %s1644_s28  ;;  %544 = vrot.lane.b32.xlu2 %v441_v61, %s1643_s27 }
 0x410   :  { %v535_v5 = vpop.permute.xlu2 %534 }
 0x411   :  { %v556_v6 = vsel %vm186_vm14, %v262_v55, %v535_v5 }
 0x430   :  { %v537_v12 = vpop.permute.xlu1 %536 }
 0x431   :  { %v557_v14 = vsel %vm186_vm14, %v265_v56, %v537_v12 }
 0x432   :  { %v543_v7 = vpop.permute.xlu0 %542 }
 0x433   :  { %v558_v8 = vsel %vm222_vm15, %v556_v6, %v543_v7 }
 0x434   :  { %v551_v9 = vpop.permute.xlu2 %550 }
 0x435   :  { %v561_v11 = vsel %vm560_vm1, %v558_v8, %v551_v9 }
 0x436   :  { %1374 = vmatmul.msk.f32.vlgmr.msra.gmra.mxu0 %vm50_vm0, %v561_v11  ;;  %v1478_v11 = vld [vmem:[%s2012_s3 + $0x3] ss:$0 sm:$0xff] }
 0x43c   :  { %v545_v13 = vpop.permute.xlu2 %544 }
 0x43d   :  { %v559_v15 = vsel %vm222_vm15, %v557_v14, %v545_v13 }
 0x454   :  { %v553_v16 = vpop.permute.xlu1 %552 }
 0x455   :  { %v562_v17 = vsel %vm560_vm1, %v559_v15, %v553_v16 }
 0x456   :  { %1375 = vmatmul.msk.f32.gmra.mxu0 %vm50_vm0, %v562_v17 }
 0x4b3   :  { %v587_v20 = vpop.f32.mrf.mxu0 }
 0x4b4   :  { %v588_v21 = vadd.f32 %v1476_v19, %v587_v20 }
 0x4b6   :  { %v1818_v22 = vadd.f32 %v588_v21, %v1696_v2 }
 0x4b8   :  { %v597_v23 = vsel %vm50_vm0, %v1818_v22, 0.0 }
 0x4b9   :  { %598 = vadd.xlane.f32.xlu2 %v597_v23 }
 0x4d3   :  { %v590_v24 = vpop.f32.mrf.mxu0 }
 0x4d4   :  { %v591_v25 = vadd.f32 %v1476_v19, %v590_v24 }
 0x4d6   :  { %v1823_v26 = vadd.f32 %v591_v25, %v1689_v0  ;;  %v715_v0 = vld [vmem:[#allocation2 + $0x48] sm:$0xff] }
 0x4d7   :  { %740 = vmatpush.msrb.mxu3 %v715_v0 }
 0x4d8   :  { %v600_v27 = vsel %vm50_vm0, %v1823_v26, 0.0 }
 0x4d9   :  { %601 = vadd.xlane.f32.xlu0 %v600_v27  ;;  %741 = vmatpush.msrb.mxu3 %v714_v38 }
 0x4da   :  { %1378 = vmatmul.msk.f32.vlgmr.msrb.gmra.mxu3 %vm50_vm0, %v42_v39  ;;  %v1479_v39 = vld [vmem:[%s2012_s3 + $0x9] ss:$0 sm:$0xff] }
 0x4e2   :  { %1379 = vmatmul.msk.f32.gmra.mxu3 %vm50_vm0, %v43_v40 }
 0x52c   :  { %v599_v28 = vpop.xlane.xlu2 %598 }
 0x52d   :  { %v603_v29 = vmul.f32 %v599_v28, %v1700_v10 }
 0x52f   :  { %v1829_v30 = vsub.f32 %v1818_v22, %v603_v29 }
 0x531   :  { %v607_v2 = vmul.f32 %v1829_v30, %v1829_v30  ;;  %v672_v8 = vmul.f32 %v1477_v1, %v1829_v30 }
 0x533   :  { %v609_v31 = vsel %vm50_vm0, %v607_v2, 0.0 }
 0x534   :  { %610 = vadd.xlane.f32.xlu1 %v609_v31 }
 0x54c   :  { %v602_v18 = vpop.xlane.xlu0 %601 }
 0x54d   :  { %v604_v34 = vmul.f32 %v602_v18, %v1700_v10 }
 0x54f   :  { %v1836_v35 = vsub.f32 %v1823_v26, %v604_v34 }
 0x551   :  { %v608_v36 = vmul.f32 %v1836_v35, %v1836_v35  ;;  %v673_v18 = vmul.f32 %v1477_v1, %v1836_v35  ;;  %v1480_v35 = vld [vmem:[%s2012_s3 + $0x8] ss:$0 sm:$0xff] }
 0x553   :  { %v612_v37 = vsel %vm50_vm0, %v608_v36, 0.0 }
 0x554   :  { %613 = vadd.xlane.f32.xlu2 %v612_v37 }
 0x55d   :  { %v743_v40 = vpop.f32.mrf.mxu3 }
 0x5a7   :  { %v611_v41 = vpop.xlane.xlu1 %610 }
 0x5a8   :  { %v615_v42 = vmul.f32 0.032258064, %v611_v41  ;;  %v744_v41 = vadd.f32 %v1479_v39, %v743_v40 }
 0x5aa   :  { %1528 = vrsqrt.f32 %v615_v42  ;;  %vm624_vm2 = vcmp.eq.f32.partialorder %v615_v42, inf  ;;  %v627_v54 = vand.u32 2147483648, %v615_v42  ;;  %vm626_vm3 = vcmp.eq.f32.partialorder %v615_v42, 0.0  ;;  %842 = vrot.lane.b32.xlu1 %v744_v41, %s1636_s16 }
 0x5b0   :  { %v1529_v44 = vpop.eup %1528 }
 0x5b1   :  { %v618_v45 = vmul.f32 %v1529_v44, %v615_v42 }
 0x5b3   :  { %v619_v47 = vmul.f32 %v1529_v44, %v618_v45 }
 0x5b5   :  { %v620_v49 = vmul.f32 0.5, %v619_v47 }
 0x5b7   :  { %v621_v51 = vsub.f32 1.5, %v620_v49 }
 0x5b9   :  { %v622_v52 = vmul.f32 %v1529_v44, %v621_v51 }
 0x5bb   :  { %v623_v53 = vmul.f32 %v622_v52, %v615_v42 }
 0x5bd   :  { %v625_v55 = vsel %vm624_vm2, %v615_v42, %v623_v53  ;;  %v746_v42 = vpop.f32.mrf.mxu3 }
 0x5be   :  { %v628_v56 = vsel %vm626_vm3, %v627_v54, %v625_v55  ;;  %v747_v43 = vadd.f32 %v1479_v39, %v746_v42 }
 0x5bf   :  { %v641_v57 = vadd.f32 1e-06, %v628_v56 }
 0x5c0   :  { %844 = vrot.lane.b32.xlu0 %v747_v43, %s1636_s16  ;;  %932 = vrot.lane.b32.xlu1 %v747_v43, %s1637_s17  ;;  %v1876_v46 = vpack.i.bf16 %v744_v41, %v747_v43 }
 0x5c1   :  { %1530 = vrcp.f32 %v641_v57  ;;  %v654_v63 = vand.u32 2147483648, %v641_v57  ;;  %v652_v4 = vand.u32 2147483647, %v641_v57  ;;  %vm648_vm5 = vweird.f32 %v641_v57  ;;  %1380 = vmatpush.xpose.msk.msrb.mxu2 %vm186_vm14, %v747_v43 }
 0x5c3   :  { %v655_v6 = vor.u32 1.1754944e-38, %v654_v63  ;;  %vm653_vm7 = vcmp.eq.f32.partialorder %v652_v4, 8.507059e+37 }
 0x5c5   :  { %1381 = vmatpush.xpose.msk.msrb.mxu2 %vm186_vm14, %v744_v41 }
 0x5c7   :  { %v1531_v58 = vpop.eup %1530  ;;  %v614_v59 = vpop.xlane.xlu2 %613 }
 0x5c8   :  { %v616_v60 = vmul.f32 0.032258064, %v614_v59  ;;  %v644_v61 = vmul.f32 %v1531_v58, %v641_v57  ;;  %vm649_vm4 = vweird.f32 %v1531_v58  ;;  %1020 = vrot.lane.b32.xlu0 %v747_v43, %s1639_s19  ;;  %1018 = vrot.lane.b32.xlu1 %v744_v41, %s1639_s19 }
 0x5c9   :  { %vm650_vm6 = vmor %vm648_vm5, %vm649_vm4 }
 0x5ca   :  { %1532 = vrsqrt.f32 %v616_v60  ;;  %v645_v62 = vsub.f32 1.0, %v644_v61  ;;  %vm636_vm8 = vcmp.eq.f32.partialorder %v616_v60, inf  ;;  %v639_v23 = vand.u32 2147483648, %v616_v60 }
 0x5cb   :  { %vm638_vm9 = vcmp.eq.f32.partialorder %v616_v60, 0.0 }
 0x5cc   :  { %v646_v3 = vmul.f32 %v1531_v58, %v645_v62 }
 0x5ce   :  { %v647_v5 = vadd.f32 %v1531_v58, %v646_v3 }
 0x5d0   :  { %v1533_v7 = vpop.eup %1532  ;;  %v651_v9 = vsel %vm650_vm6, %v1531_v58, %v647_v5 }
 0x5d1   :  { %v630_v12 = vmul.f32 %v1533_v7, %v616_v60  ;;  %v656_v13 = vsel %vm653_vm7, %v655_v6, %v651_v9 }
 0x5d2   :  { %v674_v14 = vmul.f32 %v672_v8, %v656_v13  ;;  %v47_v8 = vld [vmem:[%s2011_s2 + $0x18] sm:$0xff] }
 0x5d3   :  { %v631_v15 = vmul.f32 %v1533_v7, %v630_v12 }
 0x5d4   :  { %v677_v16 = vadd.f32 %v1478_v11, %v674_v14 }
 0x5d5   :  { %v632_v17 = vmul.f32 0.5, %v631_v15 }
 0x5d6   :  { %1376 = vmatmul.msk.f32.vlgmr.msra.gmra.mxu1 %vm50_vm0, %v677_v16 }
 0x5d7   :  { %v633_v19 = vsub.f32 1.5, %v632_v17 }
 0x5d9   :  { %v634_v20 = vmul.f32 %v1533_v7, %v633_v19 }
 0x5db   :  { %v635_v21 = vmul.f32 %v634_v20, %v616_v60 }
 0x5dd   :  { %v637_v24 = vsel %vm636_vm8, %v616_v60, %v635_v21  ;;  %v46_v60 = vld [vmem:[%s2011_s2 + $0x10] sm:$0xff]  ;;  %s1335_s2 = sshll.u32 %s2015_s6, 4  ;;  %s1336_s2 = int_to_ptr.hbm [resolvable:$true] %s1335_s2 }
 0x5de   :  { %v640_v25 = vsel %vm638_vm9, %v639_v23, %v637_v24 }
 0x5df   :  { %v642_v27 = vadd.f32 1e-06, %v640_v25 }
 0x5e1   :  { %1534 = vrcp.f32 %v642_v27  ;;  %v668_v2 = vand.u32 2147483648, %v642_v27  ;;  %v666_v32 = vand.u32 2147483647, %v642_v27  ;;  %vm662_vm11 = vweird.f32 %v642_v27 }
 0x5e3   :  { %v669_v0 = vor.u32 1.1754944e-38, %v668_v2  ;;  %vm667_vm13 = vcmp.eq.f32.partialorder %v666_v32, 8.507059e+37 }
 0x5e7   :  { %v1535_v28 = vpop.eup %1534 }
 0x5e8   :  { %v658_v29 = vmul.f32 %v1535_v28, %v642_v27  ;;  %vm663_vm10 = vweird.f32 %v1535_v28 }
 0x5e9   :  { %vm664_vm12 = vmor %vm662_vm11, %vm663_vm10  ;;  %vm1295_vm11 = vcmask 523264  }
 0x5ea   :  { %v659_v30 = vsub.f32 1.0, %v658_v29 }
 0x5ec   :  { %v660_v31 = vmul.f32 %v1535_v28, %v659_v30 }
 0x5ee   :  { %v661_v33 = vadd.f32 %v1535_v28, %v660_v31 }
 0x5f0   :  { %v665_v34 = vsel %vm664_vm12, %v1535_v28, %v661_v33 }
 0x5f1   :  { %v670_v36 = vsel %vm667_vm13, %v669_v0, %v665_v34 }
 0x5f2   :  { %v675_v37 = vmul.f32 %v673_v18, %v670_v36 }
 0x5f4   :  { %v678_v38 = vadd.f32 %v1478_v11, %v675_v37 }
 0x5f6   :  { %1377 = vmatmul.msk.f32.gmra.mxu1 %vm50_vm0, %v678_v38 }
 0x61c   :  { %v843_v49 = vpop.permute.xlu1 %842 }
 0x632   :  { %v845_v50 = vpop.permute.xlu0 %844  ;;  %v933_v51 = vpop.permute.xlu1 %932 }
 0x633   :  { %1386 = vmatpush.xpose.msk.msrb.mxu1 %vm186_vm14, %v845_v50  ;;  %1392 = vmatpush.xpose.msk.msra.mxu2 %vm186_vm14, %v933_v51 }
 0x637   :  { %1387 = vmatpush.xpose.msk.msrb.mxu1 %vm186_vm14, %v843_v49 }
 0x63a   :  { %v1021_v52 = vpop.permute.xlu0 %1020  ;;  %v1019_v53 = vpop.permute.xlu1 %1018 }
 0x63b   :  { %1398 = vmatpush.xpose.msk.msra.mxu1 %vm186_vm14, %v1021_v52 }
 0x63f   :  { %1399 = vmatpush.xpose.msk.msra.mxu1 %vm186_vm14, %v1019_v53 }
 0x653   :  { %v708_v44 = vpop.f32.mrf.mxu1 }
 0x654   :  { %v709_v45 = vadd.f32 %v1480_v35, %v708_v44 }
 0x656   :  { %838 = vrot.lane.b32.xlu2 %v709_v45, %s1636_s16  ;;  %1382 = vmatmul.msk.f32.vlgmr.msrb.gmra.mxu2 %vm186_vm14, %v709_v45 }
 0x65e   :  { %930 = vrot.lane.b32.xlu2 %v744_v41, %s1637_s17 }
 0x666   :  { %1014 = vrot.lane.b32.xlu2 %v709_v45, %s1639_s19 }
 0x66e   :  { %1459 = vrot.lane.b32.xlu2 %v1876_v46, %s1632_s12 }
 0x673   :  { %v711_v47 = vpop.f32.mrf.mxu1 }
 0x674   :  { %v712_v48 = vadd.f32 %v1480_v35, %v711_v47 }
 0x676   :  { %928 = vrot.lane.b32.xlu1 %v712_v48, %s1637_s17  ;;  %840 = vrot.lane.b32.xlu0 %v712_v48, %s1636_s16 }
 0x677   :  { %1383 = vmatmul.msk.f32.gmra.mxu2 %vm186_vm14, %v712_v48 }
 0x67e   :  { %926 = vrot.lane.b32.xlu0 %v709_v45, %s1637_s17 }
 0x686   :  { %1016 = vrot.lane.b32.xlu0 %v712_v48, %s1639_s19 }
 0x68e   :  { %1454 = vrot.lane.b32.xlu0 %v1876_v46, %s1633_s13 }
 0x6b0   :  { %v839_v54 = vpop.permute.xlu2 %838 }
 0x6b1   :  { %1388 = vmatmul.msk.f32.vlgmr.msrb.gmra.mxu1 %vm186_vm14, %v839_v54 }
 0x6b8   :  { %v931_v55 = vpop.permute.xlu2 %930 }
 0x6b9   :  { %1393 = vmatpush.xpose.msk.msra.mxu2 %vm186_vm14, %v931_v55 }
 0x6c0   :  { %v1015_v56 = vpop.permute.xlu2 %1014 }
 0x6c8   :  { %v1460_v57 = vpop.permute.xlu2 %1459 }
 0x6c9   :  { %v1461_v58 = vunpack.i.l.bf16 %v1460_v57  ;;  %v1462_v59 = vunpack.i.h.bf16 %v1460_v57 }
 0x6cb   :  { %829 = vmatpush.msrb.mxu0 %v1461_v58 }
 0x6cd   :  { %830 = vmatpush.msrb.mxu0 %v1462_v59 }
 0x6d9   :  { %v783_v61 = vpop.f32.mrf.mxu2 }
 0x6da   :  { %v784_v62 = vadd.f32 %v783_v61, %v46_v60 }
 0x6dc   :  { %v789_v63 = vmul.f32 1.442695, %v784_v62 }
 0x6de   :  { %1536 = vpow2.f32 %v789_v63 }
 0x6e4   :  { %v1537_v1 = vpop.eup %1536 }
 0x6e5   :  { %v793_v3 = vsel %vm222_vm15, %v1537_v1, 0.0 }
 0x6e6   :  { %794 = vadd.xlane.f32.xlu1 %v793_v3 }
 0x6e8   :  { %v841_v4 = vpop.permute.xlu0 %840  ;;  %v929_v6 = vpop.permute.xlu1 %928 }
 0x6e9   :  { %1389 = vmatmul.msk.f32.gmra.mxu1 %vm186_vm14, %v841_v4 }
 0x6f0   :  { %v927_v5 = vpop.permute.xlu0 %926 }
 0x6f1   :  { %1394 = vmatmul.msk.f32.vlgmr.msra.gmra.mxu2 %vm186_vm14, %v927_v5  ;;  %1400 = vmatmul.msk.f32.vlgmr.msra.gmra.mxu1 %vm186_vm14, %v1015_v56 }
 0x6f8   :  { %v1017_v7 = vpop.permute.xlu0 %1016 }
 0x6f9   :  { %1395 = vmatmul.msk.f32.gmra.mxu2 %vm186_vm14, %v929_v6  ;;  %1401 = vmatmul.msk.f32.gmra.mxu1 %vm186_vm14, %v1017_v7 }
 0x6fa   :  { %v786_v9 = vpop.f32.mrf.mxu2 }
 0x6fb   :  { %v787_v11 = vadd.f32 %v786_v9, %v47_v8 }
 0x6fd   :  { %v791_v12 = vmul.f32 1.442695, %v787_v11 }
 0x6ff   :  { %1538 = vpow2.f32 %v791_v12 }
 0x700   :  { %v1455_v13 = vpop.permute.xlu0 %1454 }
 0x701   :  { %v1456_v14 = vunpack.i.l.bf16 %v1455_v13  ;;  %v1457_v15 = vunpack.i.h.bf16 %v1455_v13 }
 0x703   :  { %917 = vmatpush.msra.mxu3 %v1456_v14 }
 0x705   :  { %v1539_v16 = vpop.eup %1538  ;;  %918 = vmatpush.msra.mxu3 %v1457_v15 }
 0x706   :  { %v796_v17 = vsel %vm222_vm15, %v1539_v16, 0.0 }
 0x707   :  { %797 = vadd.xlane.f32.xlu1 %v796_v17 }
 0x72e   :  { %v871_v19 = vpop.f32.mrf.mxu1 }
 0x72f   :  { %v872_v20 = vadd.f32 %v871_v19, %v46_v60 }
 0x731   :  { %v877_v21 = vmul.f32 1.442695, %v872_v20 }
 0x733   :  { %1540 = vpow2.f32 %v877_v21 }
 0x739   :  { %v1541_v23 = vpop.eup %1540 }
 0x73a   :  { %v881_v24 = vsel %vm222_vm15, %v1541_v23, 0.0 }
 0x73b   :  { %882 = vadd.xlane.f32.xlu2 %v881_v24 }
 0x753   :  { %1469 = vrot.lane.b32.xlu2 %v1876_v46, %s1635_s15 }
 0x759   :  { %v795_v25 = vpop.xlane.xlu1 %794 }
 0x75a   :  { %1542 = vrcp.f32 %v795_v25 }
 0x760   :  { %v1543_v27 = vpop.eup %1542 }
 0x761   :  { %v801_v28 = vmul.f32 %v1543_v27, %v1537_v1 }
 0x763   :  { %1384 = vmatmul.msk.f32.vlgmr.msrb.gmra.mxu0 %vm222_vm15, %v801_v28  ;;  %v752_v28 = vld [vmem:[#allocation2 + $0xb0] sm:$0xff] }
 0x764   :  { %1151 = vmatpush.msrb.mxu2 %v752_v28 }
 0x766   :  { %v874_v29 = vpop.f32.mrf.mxu1 }
 0x767   :  { %v875_v30 = vadd.f32 %v874_v29, %v47_v8  ;;  %v751_v29 = vld [vmem:[#allocation2 + $0x80] sm:$0xff] }
 0x768   :  { %1152 = vmatpush.msrb.mxu2 %v751_v29 }
 0x769   :  { %v879_v2 = vmul.f32 1.442695, %v875_v30  ;;  %v750_v30 = vld [vmem:[#allocation2 + $0x50] sm:$0xff] }
 0x76a   :  { %1153 = vmatpush.msrb.mxu2 %v750_v30 }
 0x76b   :  { %1544 = vpow2.f32 %v879_v2  ;;  %v749_v2 = vld [vmem:[#allocation2 + $0x20] sm:$0xff] }
 0x76c   :  { %1154 = vmatpush.msrb.mxu2 %v749_v2 }
 0x76e   :  { %v1047_v31 = vpop.f32.mrf.mxu1 }
 0x76f   :  { %v1048_v32 = vadd.f32 %v1047_v31, %v46_v60 }
 0x771   :  { %v1545_v33 = vpop.eup %1544  ;;  %v1053_v0 = vmul.f32 1.442695, %v1048_v32 }
 0x772   :  { %v884_v18 = vsel %vm222_vm15, %v1545_v33, 0.0 }
 0x773   :  { %1546 = vpow2.f32 %v1053_v0  ;;  %885 = vadd.xlane.f32.xlu0 %v884_v18 }
 0x774   :  { %v959_v34 = vpop.f32.mrf.mxu2 }
 0x775   :  { %v960_v36 = vadd.f32 %v959_v34, %v46_v60 }
 0x776   :  { %v1050_v37 = vpop.f32.mrf.mxu1 }
 0x777   :  { %v965_v38 = vmul.f32 1.442695, %v960_v36  ;;  %v1051_v39 = vadd.f32 %v1050_v37, %v47_v8 }
 0x779   :  { %v1547_v40 = vpop.eup %1546  ;;  %1548 = vpow2.f32 %v965_v38  ;;  %v1055_v43 = vmul.f32 1.442695, %v1051_v39 }
 0x77a   :  { %v798_v41 = vpop.xlane.xlu1 %797  ;;  %v1057_v42 = vsel %vm222_vm15, %v1547_v40, 0.0 }
 0x77b   :  { %1058 = vadd.xlane.f32.xlu1 %v1057_v42  ;;  %1550 = vrcp.f32 %v798_v41  ;;  %v1481_v42 = vld [vmem:[%s2012_s3 + $0xa] ss:$0 sm:$0xff] }
 0x77c   :  { %v962_v35 = vpop.f32.mrf.mxu2  ;;  %1552 = vpow2.f32 %v1055_v43 }
 0x77d   :  { %v963_v45 = vadd.f32 %v962_v35, %v47_v8 }
 0x77f   :  { %v1549_v44 = vpop.eup %1548  ;;  %v967_v49 = vmul.f32 1.442695, %v963_v45 }
 0x780   :  { %v969_v47 = vsel %vm222_vm15, %v1549_v44, 0.0 }
 0x781   :  { %970 = vadd.xlane.f32.xlu0 %v969_v47  ;;  %v1551_v48 = vpop.eup %1550  ;;  %1554 = vpow2.f32 %v967_v49 }
 0x782   :  { %v802_v50 = vmul.f32 %v1551_v48, %v1539_v16  ;;  %v1553_v51 = vpop.eup %1552 }
 0x783   :  { %v1060_v52 = vsel %vm222_vm15, %v1553_v51, 0.0 }
 0x784   :  { %1385 = vmatmul.msk.f32.gmra.mxu0 %vm222_vm15, %v802_v50 }
 0x787   :  { %v1555_v53 = vpop.eup %1554 }
 0x788   :  { %v972_v54 = vsel %vm222_vm15, %v1555_v53, 0.0 }
 0x789   :  { %1061 = vadd.xlane.f32.xlu0 %v1060_v52 }
 0x791   :  { %973 = vadd.xlane.f32.xlu0 %v972_v54 }
 0x794   :  { %1464 = vrot.lane.b32.xlu1 %v1876_v46, %s1634_s14  ;;  %s1645_s14 = smov [#allocation5]  }
 0x795   :  { %s1333_s15 = sshll.u32 %s1645_s14, 4  ;;  %s1334_s15 = int_to_ptr.vmem [resolvable:$true] %s1333_s15 }
 0x7ae   :  { %v883_v55 = vpop.xlane.xlu2 %882 }
 0x7af   :  { %1556 = vrcp.f32 %v883_v55 }
 0x7b5   :  { %v1557_v56 = vpop.eup %1556 }
 0x7b6   :  { %v889_v57 = vmul.f32 %v1557_v56, %v1541_v23  ;;  %v1470_v58 = vpop.permute.xlu2 %1469 }
 0x7b7   :  { %v1471_v59 = vunpack.i.l.bf16 %v1470_v58  ;;  %v1472_v60 = vunpack.i.h.bf16 %v1470_v58 }
 0x7b8   :  { %1390 = vmatmul.msk.f32.vlgmr.msra.gmra.mxu3 %vm222_vm15, %v889_v57 }
 0x7b9   :  { %1005 = vmatpush.msra.mxu0 %v1471_v59 }
 0x7bb   :  { %1006 = vmatpush.msra.mxu0 %v1472_v60 }
 0x7e0   :  { %v832_v19 = vpop.f32.mrf.mxu0 }
 0x7e6   :  { %v886_v61 = vpop.xlane.xlu0 %885 }
 0x7e7   :  { %1558 = vrcp.f32 %v886_v61 }
 0x7ed   :  { %v1559_v62 = vpop.eup %1558 }
 0x7ee   :  { %v890_v63 = vmul.f32 %v1559_v62, %v1545_v33  ;;  %v1059_v5 = vpop.xlane.xlu1 %1058  ;;  %v1251_v62 = vld [vmem:[#allocation2 + $0xb8] sm:$0xff] }
 0x7ef   :  { %1272 = vmatpush.msrb.mxu0 %v1251_v62  ;;  %v1286_v62 = vld [vmem:[%s2014_s5 + $0x8] sm:$0xff] }
 0x7f0   :  { %1391 = vmatmul.msk.f32.gmra.mxu3 %vm222_vm15, %v890_v63 }
 0x7f4   :  { %v971_v1 = vpop.xlane.xlu0 %970 }
 0x7f5   :  { %1560 = vrcp.f32 %v971_v1  ;;  %v1250_v1 = vld [vmem:[#allocation2 + $0x88] sm:$0xff] }
 0x7f6   :  { %1562 = vrcp.f32 %v1059_v5  ;;  %1273 = vmatpush.msrb.mxu0 %v1250_v1 }
 0x7fb   :  { %v1561_v46 = vpop.eup %1560 }
 0x7fc   :  { %v977_v3 = vmul.f32 %v1561_v46, %v1549_v44  ;;  %v1062_v4 = vpop.xlane.xlu0 %1061  ;;  %v1563_v8 = vpop.eup %1562 }
 0x7fd   :  { %v1065_v12 = vmul.f32 %v1563_v8, %v1547_v40 }
 0x7fe   :  { %1396 = vmatmul.msk.f32.vlgmr.msra.gmra.mxu0 %vm222_vm15, %v977_v3 }
 0x801   :  { %v835_v20 = vpop.f32.mrf.mxu0 }
 0x804   :  { %v974_v6 = vpop.xlane.xlu0 %973 }
 0x805   :  { %1564 = vrcp.f32 %v974_v6 }
 0x806   :  { %v1465_v7 = vpop.permute.xlu1 %1464  ;;  %1566 = vrcp.f32 %v1062_v4  ;;  %v1248_v4 = vld [vmem:[#allocation2 + $0x28] sm:$0xff] }
 0x807   :  { %v1466_v9 = vunpack.i.l.bf16 %v1465_v7  ;;  %v1467_v11 = vunpack.i.h.bf16 %v1465_v7 }
 0x809   :  { %1093 = vmatpush.msrb.mxu3 %v1466_v9 }
 0x80b   :  { %v1565_v13 = vpop.eup %1564  ;;  %1094 = vmatpush.msrb.mxu3 %v1467_v11 }
 0x80c   :  { %1402 = vmatmul.msk.f32.vlgmr.msrb.gmra.mxu3 %vm222_vm15, %v1065_v12  ;;  %v978_v14 = vmul.f32 %v1565_v13, %v1555_v53  ;;  %v1567_v15 = vpop.eup %1566 }
 0x80d   :  { %v1066_v16 = vmul.f32 %v1567_v15, %v1553_v51 }
 0x80e   :  { %1397 = vmatmul.msk.f32.gmra.mxu0 %vm222_vm15, %v978_v14 }
 0x814   :  { %1403 = vmatmul.msk.f32.gmra.mxu3 %vm222_vm15, %v1066_v16 }
 0x83b   :  { %v920_v17 = vpop.f32.mrf.mxu3 }
 0x83c   :  { %1104 = vrot.lane.b32.xlu2 %v920_v17, %s1642_s26 }
 0x873   :  { %v923_v21 = vpop.f32.mrf.mxu3 }
 0x874   :  { %1106 = vrot.lane.b32.xlu1 %v923_v21, %s1642_s26  ;;  %v1482_v21 = vld [vmem:[%s2012_s3 + $0x4] ss:$0 sm:$0xff] }
 0x87b   :  { %v1008_v23 = vpop.f32.mrf.mxu0 }
 0x87c   :  { %1112 = vrot.lane.b32.xlu0 %v1008_v23, %s1643_s27 }
 0x88b   :  { %v1011_v25 = vpop.f32.mrf.mxu0 }
 0x88f   :  { %v1096_v24 = vpop.f32.mrf.mxu3 }
 0x890   :  { %1120 = vrot.lane.b32.xlu2 %v1096_v24, %s1644_s28 }
 0x896   :  { %v1105_v31 = vpop.permute.xlu2 %1104 }
 0x897   :  { %v1099_v27 = vpop.f32.mrf.mxu3  ;;  %v1126_v32 = vsel %vm186_vm14, %v832_v19, %v1105_v31 }
 0x898   :  { %1122 = vrot.lane.b32.xlu1 %v1099_v27, %s1644_s28  ;;  %1114 = vrot.lane.b32.xlu2 %v1011_v25, %s1643_s27 }
 0x8e6   :  { %v1107_v36 = vpop.permute.xlu1 %1106 }
 0x8e7   :  { %v1127_v38 = vsel %vm186_vm14, %v835_v20, %v1107_v36 }
 0x8ea   :  { %v1121_v0 = vpop.permute.xlu2 %1120 }
 0x8ee   :  { %v1113_v33 = vpop.permute.xlu0 %1112 }
 0x8ef   :  { %v1128_v18 = vsel %vm222_vm15, %v1126_v32, %v1113_v33  ;;  %v1483_v32 = vld [vmem:[%s2012_s3 + $0x5] ss:$0 sm:$0xff] }
 0x8f0   :  { %v1130_v34 = vsel %vm560_vm1, %v1128_v18, %v1121_v0  ;;  %v1292_v0 = vld [vmem:[%s2014_s5 + $0x38] sm:$0xff]  ;;  %v1291_v18 = vld [vmem:[%s2014_s5 + $0x30] sm:$0xff] }
 0x8f1   :  { %1404 = vmatmul.msk.f32.vlgmr.msrb.gmra.mxu2 %vm50_vm0, %v1130_v34  ;;  %1310 = vmatpush.msrb.mxu1 %v1292_v0 }
 0x8f2   :  { %v1115_v37 = vpop.permute.xlu2 %1114 }
 0x8f3   :  { %v1129_v39 = vsel %vm222_vm15, %v1127_v38, %v1115_v37  ;;  %v1290_v37 = vld [vmem:[%s2014_s5 + $0x28] sm:$0xff]  ;;  %1311 = vmatpush.msrb.mxu1 %v1291_v18 }
 0x8f5   :  { %1312 = vmatpush.msrb.mxu1 %v1290_v37 }
 0x90a   :  { %v1123_v40 = vpop.permute.xlu1 %1122 }
 0x90b   :  { %v1131_v41 = vsel %vm560_vm1, %v1129_v39, %v1123_v40  ;;  %v1289_v40 = vld [vmem:[%s2014_s5 + $0x20] sm:$0xff] }
 0x90c   :  { %1405 = vmatmul.msk.f32.gmra.mxu2 %vm50_vm0, %v1131_v41  ;;  %1313 = vmatpush.msrb.mxu1 %v1289_v40 }
 0x974   :  { %v1156_v43 = vpop.f32.mrf.mxu2 }
 0x975   :  { %v1157_v35 = vadd.f32 %v1481_v42, %v1156_v43  ;;  %v1288_v43 = vld [vmem:[%s2014_s5 + $0x18] sm:$0xff] }
 0x976   :  { %1314 = vmatpush.msrb.mxu1 %v1288_v43 }
 0x977   :  { %v1943_v44 = vadd.f32 %v1157_v35, %v1818_v22 }
 0x979   :  { %v1166_v45 = vsel %vm50_vm0, %v1943_v44, 0.0 }
 0x97a   :  { %1167 = vadd.xlane.f32.xlu2 %v1166_v45 }
 0x98f   :  { %v1159_v47 = vpop.f32.mrf.mxu2 }
 0x990   :  { %v1160_v48 = vadd.f32 %v1481_v42, %v1159_v47 }
 0x992   :  { %v1948_v49 = vadd.f32 %v1160_v48, %v1823_v26 }
 0x994   :  { %v1169_v50 = vsel %vm50_vm0, %v1948_v49, 0.0 }
 0x995   :  { %1170 = vadd.xlane.f32.xlu0 %v1169_v50 }
 0x9ed   :  { %v1168_v51 = vpop.xlane.xlu2 %1167 }
 0x9ee   :  { %v1172_v52 = vmul.f32 %v1168_v51, %v1700_v10 }
 0x9f0   :  { %v1174_v53 = vsub.f32 %v1943_v44, %v1172_v52 }
 0x9f2   :  { %v1176_v22 = vmul.f32 %v1174_v53, %v1174_v53  ;;  %v1241_v30 = vmul.f32 %v1482_v21, %v1174_v53 }
 0x9f4   :  { %v1178_v54 = vsel %vm50_vm0, %v1176_v22, 0.0 }
 0x9f5   :  { %1179 = vadd.xlane.f32.xlu1 %v1178_v54 }
 0xa08   :  { %v1171_v55 = vpop.xlane.xlu0 %1170 }
 0xa09   :  { %v1173_v56 = vmul.f32 %v1171_v55, %v1700_v10  ;;  %v1249_v10 = vld [vmem:[#allocation2 + $0x58] sm:$0xff] }
 0xa0a   :  { %1274 = vmatpush.msrb.mxu0 %v1249_v10 }
 0xa0b   :  { %v1957_v57 = vsub.f32 %v1948_v49, %v1173_v56 }
 0xa0c   :  { %1275 = vmatpush.msrb.mxu0 %v1248_v4 }
 0xa0d   :  { %v1177_v26 = vmul.f32 %v1957_v57, %v1957_v57  ;;  %v1242_v56 = vmul.f32 %v1482_v21, %v1957_v57  ;;  %v1285_v57 = vld [vmem:[%s2014_s5] sm:$0xff] }
 0xa0f   :  { %v1181_v58 = vsel %vm50_vm0, %v1177_v26, 0.0 }
 0xa10   :  { %1182 = vadd.xlane.f32.xlu2 %v1181_v58 }
 0xa68   :  { %v1180_v59 = vpop.xlane.xlu1 %1179 }
 0xa69   :  { %v1184_v60 = vmul.f32 0.032258064, %v1180_v59 }
 0xa6b   :  { %1568 = vrsqrt.f32 %v1184_v60  ;;  %vm1193_vm14 = vcmp.eq.f32.partialorder %v1184_v60, inf  ;;  %v1196_v8 = vand.u32 2147483648, %v1184_v60  ;;  %vm1195_vm15 = vcmp.eq.f32.partialorder %v1184_v60, 0.0 }
 0xa71   :  { %v1569_v61 = vpop.eup %1568 }
 0xa72   :  { %v1187_v63 = vmul.f32 %v1569_v61, %v1184_v60 }
 0xa74   :  { %v1188_v46 = vmul.f32 %v1569_v61, %v1187_v63  ;;  %v1484_v63 = vld [vmem:[%s2012_s3 + $0xb] ss:$0 sm:$0xff] }
 0xa76   :  { %v1189_v3 = vmul.f32 0.5, %v1188_v46 }
 0xa78   :  { %v1190_v5 = vsub.f32 1.5, %v1189_v3 }
 0xa7a   :  { %v1191_v6 = vmul.f32 %v1569_v61, %v1190_v5  ;;  %v1287_v61 = vld [vmem:[%s2014_s5 + $0x10] sm:$0xff] }
 0xa7b   :  { %1315 = vmatpush.msrb.mxu1 %v1287_v61 }
 0xa7c   :  { %v1192_v7 = vmul.f32 %v1191_v6, %v1184_v60  ;;  %v1485_v6 = vld [vmem:[%s2012_s3 + $0xc] ss:$0 sm:$0xff]  ;;  %s1646_s3 = smov 128  }
 0xa7d   :  { %1316 = vmatpush.msrb.mxu1 %v1286_v62 }
 0xa7e   :  { %v1194_v9 = vsel %vm1193_vm14, %v1184_v60, %v1192_v7 }
 0xa7f   :  { %v1197_v11 = vsel %vm1195_vm15, %v1196_v8, %v1194_v9  ;;  %1317 = vmatpush.msrb.mxu1 %v1285_v57 }
 0xa80   :  { %v1210_v12 = vadd.f32 1e-06, %v1197_v11 }
 0xa82   :  { %1570 = vrcp.f32 %v1210_v12  ;;  %v1223_v20 = vand.u32 2147483648, %v1210_v12  ;;  %v1221_v25 = vand.u32 2147483647, %v1210_v12  ;;  %vm1217_vm2 = vweird.f32 %v1210_v12 }
 0xa83   :  { %v1183_v13 = vpop.xlane.xlu2 %1182 }
 0xa84   :  { %v1185_v14 = vmul.f32 0.032258064, %v1183_v13  ;;  %v1224_v29 = vor.u32 1.1754944e-38, %v1223_v20  ;;  %vm1222_vm4 = vcmp.eq.f32.partialorder %v1221_v25, 8.507059e+37 }
 0xa86   :  { %1572 = vrsqrt.f32 %v1185_v14  ;;  %vm1205_vm5 = vcmp.eq.f32.partialorder %v1185_v14, inf  ;;  %v1208_v42 = vand.u32 2147483648, %v1185_v14  ;;  %vm1207_vm6 = vcmp.eq.f32.partialorder %v1185_v14, 0.0 }
 0xa88   :  { %v1571_v15 = vpop.eup %1570 }
 0xa89   :  { %v1213_v16 = vmul.f32 %v1571_v15, %v1210_v12  ;;  %vm1218_vm1 = vweird.f32 %v1571_v15 }
 0xa8a   :  { %vm1219_vm3 = vmor %vm1217_vm2, %vm1218_vm1 }
 0xa8b   :  { %v1214_v17 = vsub.f32 1.0, %v1213_v16 }
 0xa8c   :  { %v1573_v19 = vpop.eup %1572 }
 0xa8d   :  { %v1199_v23 = vmul.f32 %v1573_v19, %v1185_v14  ;;  %v1215_v24 = vmul.f32 %v1571_v15, %v1214_v17 }
 0xa8f   :  { %v1200_v27 = vmul.f32 %v1573_v19, %v1199_v23  ;;  %v1216_v28 = vadd.f32 %v1571_v15, %v1215_v24 }
 0xa91   :  { %v1201_v2 = vmul.f32 0.5, %v1200_v27  ;;  %v1220_v31 = vsel %vm1219_vm3, %v1571_v15, %v1216_v28 }
 0xa92   :  { %v1225_v33 = vsel %vm1222_vm4, %v1224_v29, %v1220_v31 }
 0xa93   :  { %v1202_v34 = vsub.f32 1.5, %v1201_v2  ;;  %v1243_v36 = vmul.f32 %v1241_v30, %v1225_v33 }
 0xa95   :  { %v1203_v38 = vmul.f32 %v1573_v19, %v1202_v34  ;;  %v1246_v39 = vadd.f32 %v1483_v32, %v1243_v36 }
 0xa97   :  { %v1204_v41 = vmul.f32 %v1203_v38, %v1185_v14  ;;  %1406 = vmatmul.msk.f32.vlgmr.msrb.gmra.mxu0 %vm50_vm0, %v1246_v39 }
 0xa99   :  { %v1206_v35 = vsel %vm1205_vm5, %v1185_v14, %v1204_v41 }
 0xa9a   :  { %v1209_v45 = vsel %vm1207_vm6, %v1208_v42, %v1206_v35 }
 0xa9b   :  { %v1211_v47 = vadd.f32 1e-06, %v1209_v45 }
 0xa9d   :  { %1574 = vrcp.f32 %v1211_v47  ;;  %v1237_v52 = vand.u32 2147483648, %v1211_v47  ;;  %v1235_v22 = vand.u32 2147483647, %v1211_v47  ;;  %vm1231_vm8 = vweird.f32 %v1211_v47 }
 0xa9f   :  { %v1238_v55 = vor.u32 1.1754944e-38, %v1237_v52  ;;  %vm1236_vm10 = vcmp.eq.f32.partialorder %v1235_v22, 8.507059e+37 }
 0xaa3   :  { %v1575_v48 = vpop.eup %1574 }
 0xaa4   :  { %v1227_v50 = vmul.f32 %v1575_v48, %v1211_v47  ;;  %vm1232_vm7 = vweird.f32 %v1575_v48 }
 0xaa5   :  { %vm1233_vm9 = vmor %vm1231_vm8, %vm1232_vm7 }
 0xaa6   :  { %v1228_v51 = vsub.f32 1.0, %v1227_v50 }
 0xaa8   :  { %v1229_v53 = vmul.f32 %v1575_v48, %v1228_v51 }
 0xaaa   :  { %v1230_v54 = vadd.f32 %v1575_v48, %v1229_v53 }
 0xaac   :  { %v1234_v26 = vsel %vm1233_vm9, %v1575_v48, %v1230_v54 }
 0xaad   :  { %v1239_v58 = vsel %vm1236_vm10, %v1238_v55, %v1234_v26 }
 0xaae   :  { %v1244_v59 = vmul.f32 %v1242_v56, %v1239_v58 }
 0xab0   :  { %v1247_v60 = vadd.f32 %v1483_v32, %v1244_v59 }
 0xab2   :  { %1407 = vmatmul.msk.f32.gmra.mxu0 %vm50_vm0, %v1247_v60 }
 0xb14   :  { %v1277_v1 = vpop.f32.mrf.mxu0 }
 0xb15   :  { %v1278_v46 = vadd.f32 %v1484_v63, %v1277_v1 }
 0xb17   :  { %v1283_v10 = vmax.f32 %v1278_v46, 0.0 }
 0xb19   :  { %1408 = vmatmul.msk.f32.vlgmr.msrb.gmra.mxu1 %vm1295_vm11, %v1283_v10 }
 0xb2f   :  { %v1280_v3 = vpop.f32.mrf.mxu0 }
 0xb30   :  { %v1281_v4 = vadd.f32 %v1484_v63, %v1280_v3 }
 0xb32   :  { %v1284_v5 = vmax.f32 %v1281_v4, 0.0 }
 0xb34   :  { %1409 = vmatmul.msk.f32.gmra.mxu1 %vm1295_vm11, %v1284_v5 }
 0xb96   :  { %v1319_v7 = vpop.f32.mrf.mxu1 }
 0xb97   :  { %v1320_v8 = vadd.f32 %v1485_v6, %v1319_v7 }
 0xb99   :  { %v1325_v9 = vadd.f32 %v1320_v8, %v1943_v44 }
 0xb9b   :  { %1327 = vst.msk [vmem:[#allocation5] sm:$0xff] %vm50_vm0, %v1325_v9 }
 0xbb1   :  { %v1322_v11 = vpop.f32.mrf.mxu1 }
 0xbb2   :  { %v1323_v12 = vadd.f32 %v1485_v6, %v1322_v11 }
 0xbb4   :  { %v1326_v13 = vadd.f32 %v1323_v12, %v1948_v49 }
 0xbb6   :  { %1328 = vst.msk [vmem:[#allocation5 + $0x8] sm:$0xff] %vm50_vm0, %v1326_v13 }
 0xbb7   :  { %1341 = dma.vmem_to_hbm [thread:$0]  %s1334_s15, 256, %s1336_s2, [#allocation4], %s1646_s3, %s1646_s3, %s1642_s26  }
 0xbb8   :  { %1626 = dma.done.wait [#allocation4], 256  }
 0xbb9   :  { %1627 = vsyncadd [#allocation4], 4294967040 }
 0xbba   :  { %1346 = vsyncpa [#allocation3], 1 }
 0xbbb   :  { %1347 = vsyncpa [#allocation4], 1 }

</bundles_post_ra>
